<compile_context>
chip_gen: v7x
topology: tpu7x:2x2x1
jax: 0.10.0
libtpu: 0.0.40
codegen_flags: <defaults>
</compile_context>

<pallas_src>
import functools
import math

import jax
import jax.numpy as jnp
import numpy as np
from jax.experimental import pallas as pl
from jax.experimental.pallas import tpu as pltpu


def _round_up(x, m):
    return ((x + m - 1) // m) * m


# ------------------- fused bidirectional LSTM layer kernel ------------------- #

def _bilstm_fused_kernel(lens_ref, xf_ref, xb_ref, wf_ref, wb_ref, whh_ref, b_ref,
                         of_ref, ob_ref, h_sc, c_sc, *, Tb, B, H):
    """One time-block of a fused forward+backward LSTM layer.

    Combined gate-column layout (width 8H): [i_f,i_b, f_f,f_b, o_f,o_b, g_f,g_b].

    lens_ref: (B, 1) int32      true sequence lengths (resident)
    xf_ref:   (Tb*B, I)         layer input rows, forward-time block tb
    xb_ref:   (Tb*B, I)         layer input rows, time block NT-1-tb (fwd order)
    wf_ref:   (I, 8H)           input->gate weights, fwd columns only (resident)
    wb_ref:   (I, 8H)           input->gate weights, bwd columns only (resident)
    whh_ref:  (2H, 8H)          block-diagonal recurrent weights (resident)
    b_ref:    (1, 8H)           combined bias b_ih + b_hh, both directions
    of_ref:   (Tb*B, H)         forward hidden outputs for block tb
    ob_ref:   (Tb*B, H)         backward hidden outputs for block NT-1-tb
    h_sc/c_sc:(B, 2H)           persistent per-direction state across the grid
    """
    tb = pl.program_id(0)
    NT = pl.num_programs(0)
    T_total = NT * Tb
    H2 = 2 * H
    H6 = 6 * H

    @pl.when(tb == 0)
    def _():
        h_sc[...] = jnp.zeros_like(h_sc)
        c_sc[...] = jnp.zeros_like(c_sc)

    # Block-level input projection for both directions (fused; weights resident).
    # Row block i of xpf corresponds to forward time tb*Tb + i; row block j of xpb
    # corresponds to backward time (NT-1-tb)*Tb + j.  Each weight has zeros in the
    # other direction's columns, so per-step gates are just xpf_row + xpb_row + rec.
    xpf = jnp.dot(xf_ref[...], wf_ref[...], preferred_element_type=jnp.float32) + b_ref[...]
    xpb = jnp.dot(xb_ref[...], wb_ref[...], preferred_element_type=jnp.float32)

    whh = whh_ref[...]                                            # (2H, 8H), read once
    lens_b = jnp.broadcast_to(lens_ref[...], (B, H2))             # hoisted broadcast
    col_is_fwd = jax.lax.broadcasted_iota(jnp.int32, (B, H2), 1) < H

    # State for both directions carried in registers across the unrolled block.
    h_cat = h_sc[...]                                             # (B, 2H)
    c_cat = c_sc[...]

    for i in range(Tb):                                           # static serial scan
        j = Tb - 1 - i
        t_f = tb * Tb + i                                         # fwd global time
        t_b = T_total - 1 - t_f                                   # bwd global time
        thresh = jnp.where(col_is_fwd, t_f, t_b)
        mask = thresh < lens_b                                    # (B, 2H) bool

        rec = jnp.dot(h_cat, whh, preferred_element_type=jnp.float32)   # (B, 8H)
        gates = xpf[i * B:(i + 1) * B, :] + xpb[j * B:(j + 1) * B, :] + rec

        sig = jax.nn.sigmoid(gates[:, :H6])                       # i|f|o for both dirs
        g_cat = jnp.tanh(gates[:, H6:])                           # (B, 2H)
        i_cat = sig[:, 0:H2]
        f_cat = sig[:, H2:2 * H2]
        o_cat = sig[:, 2 * H2:3 * H2]

        c_new = f_cat * c_cat + i_cat * g_cat
        h_new = o_cat * jnp.tanh(c_new)

        h_out = jnp.where(mask, h_new, 0.0)                       # zeros past seq end
        of_ref[i * B:(i + 1) * B, :] = h_out[:, :H]
        ob_ref[j * B:(j + 1) * B, :] = h_out[:, H:]

        h_cat = jnp.where(mask, h_new, h_cat)                     # freeze past seq end
        c_cat = jnp.where(mask, c_new, c_cat)

    # Persist state to scratch once per block (carried to the next grid step).
    h_sc[...] = h_cat
    c_sc[...] = c_cat


def bilstm_layer_pallas(x2d, lens_col, wf_ext, wb_ext, whh_bd, bias_row,
                        *, T_pad, B, H, Tb):
    """x2d: (T_pad*B, I) time-major rows -> (out_f, out_b) each (T_pad*B, H)."""
    I = x2d.shape[1]
    NT = T_pad // Tb
    kernel = functools.partial(_bilstm_fused_kernel, Tb=Tb, B=B, H=H)

    return pl.pallas_call(
        kernel,
        out_shape=(jax.ShapeDtypeStruct((T_pad * B, H), jnp.float32),
                   jax.ShapeDtypeStruct((T_pad * B, H), jnp.float32)),
        grid=(NT,),
        in_specs=[
            pl.BlockSpec((B, 1), lambda t: (0, 0)),                    # lens (resident)
            pl.BlockSpec((Tb * B, I), lambda t: (t, 0)),               # x, fwd-time block
            pl.BlockSpec((Tb * B, I), lambda t: (NT - 1 - t, 0)),      # x, reversed-time block
            pl.BlockSpec((I, 8 * H), lambda t: (0, 0)),                # Wih fwd (resident)
            pl.BlockSpec((I, 8 * H), lambda t: (0, 0)),                # Wih bwd (resident)
            pl.BlockSpec((2 * H, 8 * H), lambda t: (0, 0)),            # Whh block-diag (resident)
            pl.BlockSpec((1, 8 * H), lambda t: (0, 0)),                # bias (resident)
        ],
        out_specs=(
            pl.BlockSpec((Tb * B, H), lambda t: (t, 0)),
            pl.BlockSpec((Tb * B, H), lambda t: (NT - 1 - t, 0)),
        ),
        scratch_shapes=[pltpu.VMEM((B, 2 * H), jnp.float32),
                        pltpu.VMEM((B, 2 * H), jnp.float32)],
        compiler_params=pltpu.CompilerParams(
            dimension_semantics=("arbitrary",),
            vmem_limit_bytes=32 * 1024 * 1024),
    )(lens_col, x2d, x2d, wf_ext, wb_ext, whh_bd, bias_row)


def _choose_tb(T, B, H, I=None, budget_bytes=16 * 1024 * 1024):
    """Time-block size: (Tb*B) kept a multiple of 8 (sublane tiling), sized so all
    VMEM users (double-buffered x/out blocks, in-kernel gate temporaries, resident
    weights, scratch) fit a conservative budget that is safe on v7x as well."""
    unit = 8 // math.gcd(B, 8)
    I = 2 * H if I is None else I
    per_t = 4 * B * (2 * I * 2          # fwd+bwd x blocks, double-buffered
                     + 2 * H * 2        # fwd+bwd out blocks, double-buffered
                     + 2 * 8 * H)       # xpf/xpb projected-gate temporaries
    resident = 4 * (2 * I * 8 * H + 2 * H * 8 * H + 8 * H + B + 2 * B * 2 * H)
    tb = max(unit, (budget_bytes - resident) // max(per_t, 1))
    tb = min(tb, 32)                    # block is fully unrolled in-kernel; keep code size sane
    tb = max(unit, (tb // unit) * unit)
    tb = min(tb, _round_up(T, unit))
    return int(tb)


# ----------------------- host-side parameter preparation --------------------- #

def _prep_layer(lp, H, w_fold=None, b_fold=None):
    """Build fused/reordered weights for one bidirectional layer.

    Gate-column layout (width 8H): [i_f,i_b, f_f,f_b, o_f,o_b, g_f,g_b]
    (canonical PyTorch order inside each direction is [i, f, g, o]).
    If w_fold/b_fold are given (layer 0), the preceding lstm_to_fnn Linear is
    folded algebraically into the input projection.
    """
    def place(dst, src4, d):
        # src4: (..., 4H) canonical [i, f, g, o]; d = 0 fwd, 1 bwd.
        dst = dst.at[..., 0 * 2 * H + d * H: 0 * 2 * H + d * H + H].set(src4[..., 0:H])          # i
        dst = dst.at[..., 1 * 2 * H + d * H: 1 * 2 * H + d * H + H].set(src4[..., H:2 * H])      # f
        dst = dst.at[..., 2 * 2 * H + d * H: 2 * 2 * H + d * H + H].set(src4[..., 3 * H:4 * H])  # o
        dst = dst.at[..., 3 * 2 * H + d * H: 3 * 2 * H + d * H + H].set(src4[..., 2 * H:3 * H])  # g
        return dst

    I = lp["fwd"]["wih"].shape[1]
    wf = place(jnp.zeros((I, 8 * H), jnp.float32), lp["fwd"]["wih"].T.astype(jnp.float32), 0)
    wb = place(jnp.zeros((I, 8 * H), jnp.float32), lp["bwd"]["wih"].T.astype(jnp.float32), 1)

    whh = jnp.zeros((2 * H, 8 * H), jnp.float32)
    whh = place(whh, jnp.pad(lp["fwd"]["whh"].T.astype(jnp.float32), ((0, H), (0, 0))), 0)
    whh = place(whh, jnp.pad(lp["bwd"]["whh"].T.astype(jnp.float32), ((H, 0), (0, 0))), 1)

    bias = jnp.zeros((8 * H,), jnp.float32)
    bias = place(bias, (lp["fwd"]["bih"] + lp["fwd"]["bhh"]).astype(jnp.float32), 0)
    bias = place(bias, (lp["bwd"]["bih"] + lp["bwd"]["bhh"]).astype(jnp.float32), 1)

    if w_fold is not None:
        # y = x @ w_fold + b_fold feeds the projection with no nonlinearity in
        # between, so fold it: x @ (w_fold @ W) + (b_fold @ W + bias).
        bias = bias + b_fold @ wf + b_fold @ wb
        wf = w_fold @ wf
        wb = w_fold @ wb
    return wf, wb, whh, bias.reshape(1, 8 * H)


# ------------------------------ model forward ------------------------------ #

def second_lstm_forward(params, seq_lengths, inputs):
    """inputs: (B, T, 2H) float32; seq_lengths: (B,) int -> (B, T, 2H)."""
    B, T, F = inputs.shape
    H = params["w_fnn"].shape[0]

    lens_col = jnp.minimum(seq_lengths.astype(jnp.int32), T).reshape(B, 1)

    Tb = _choose_tb(T, B, H)
    T_pad = _round_up(T, Tb)

    # Time-major once; stay time-major and time-padded across all layers.
    x_tm = jnp.transpose(inputs.astype(jnp.float32), (1, 0, 2))      # (T, B, 2H)
    if T_pad != T:
        x_tm = jnp.pad(x_tm, ((0, T_pad - T), (0, 0), (0, 0)))
    x2d = x_tm.reshape(T_pad * B, F)

    for layer_idx, lp in enumerate(params["lstm_layers"]):
        if layer_idx == 0:
            # lstm_to_fnn folded into the layer-0 input projection.
            wf, wb, whh, bias = _prep_layer(lp, H,
                                            w_fold=params["w_fnn"].T.astype(jnp.float32),
                                            b_fold=params["b_fnn"].astype(jnp.float32))
        else:
            wf, wb, whh, bias = _prep_layer(lp, H)

        out_f, out_b = bilstm_layer_pallas(x2d, lens_col, wf, wb, whh, bias,
                                           T_pad=T_pad, B=B, H=H, Tb=Tb)
        x2d = jnp.concatenate([out_f, out_b], axis=-1)                # (T_pad*B, 2H)

    out = x2d.reshape(T_pad, B, 2 * H)[:T]
    return jnp.transpose(out, (1, 0, 2))                              # (B, T, 2H)


# ---------------------------- pure-JAX reference ---------------------------- #

def ref_forward(params, seq_lengths, inputs):
    B, T, F = inputs.shape
    H = params["w_fnn"].shape[0]
    x = inputs @ params["w_fnn"].T + params["b_fnn"]
    lens = seq_lengths.astype(jnp.int32)
    valid = (jnp.arange(T)[None, :] < lens[:, None]).astype(jnp.float32)

    def run_dir(x_btI, p, reverse):
        def step(carry, t):
            h, c = carry
            xt = x_btI[:, t, :]
            gates = xt @ p["wih"].T + p["bih"] + h @ p["whh"].T + p["bhh"]
            i = jax.nn.sigmoid(gates[:, :H])
            f = jax.nn.sigmoid(gates[:, H:2 * H])
            g = jnp.tanh(gates[:, 2 * H:3 * H])
            o = jax.nn.sigmoid(gates[:, 3 * H:])
            c_new = f * c + i * g
            h_new = o * jnp.tanh(c_new)
            m = valid[:, t][:, None]
            c = m * c_new + (1.0 - m) * c
            h = m * h_new + (1.0 - m) * h
            return (h, c), m * h_new

        ts = jnp.arange(T)[::-1] if reverse else jnp.arange(T)
        init = (jnp.zeros((B, H), jnp.float32), jnp.zeros((B, H), jnp.float32))
        _, outs = jax.lax.scan(step, init, ts)
        if reverse:
            outs = outs[::-1]
        return jnp.transpose(outs, (1, 0, 2))

    layer_in = x
    for lp in params["lstm_layers"]:
        of = run_dir(layer_in, lp["fwd"], False)
        ob = run_dir(layer_in, lp["bwd"], True)
        layer_in = jnp.concatenate([of, ob], axis=-1)
    return layer_in


# ------------------------------- param init -------------------------------- #

def init_params(key, hidden_lstm, layers_lstm):
    H = hidden_lstm
    keys = iter(jax.random.split(key, 2 + layers_lstm * 2 * 4))

    def u(k, shape, scale):
        return jax.random.uniform(k, shape, jnp.float32, -1.0, 1.0) * scale

    params = {
        "w_fnn": u(next(keys), (H, 2 * H), 0.1),   # nn.Linear(2H -> H)
        "b_fnn": u(next(keys), (H,), 0.1),
        "lstm_layers": [],
    }
    for layer in range(layers_lstm):
        in_dim = H if layer == 0 else 2 * H
        layer_p = {}
        for d in ("fwd", "bwd"):
            layer_p[d] = {
                "wih": u(next(keys), (4 * H, in_dim), 0.1),
                "whh": u(next(keys), (4 * H, H), 0.1),
                "bih": u(next(keys), (4 * H,), 0.1),
                "bhh": u(next(keys), (4 * H,), 0.1),
            }
        params["lstm_layers"].append(layer_p)
    return params


# ---------------------------------- main ------------------------------------ #

if __name__ == "__main__":
    # settings: hidden_lstm=32, layers_lstm=2, batch=2, seq=8
    H, LAYERS, B, T = 32, 2, 2, 8

    key = jax.random.PRNGKey(0)
    k_param, k_in = jax.random.split(key)
    params = init_params(k_param, H, LAYERS)

    inputs = jax.random.normal(k_in, (B, T, 2 * H), jnp.float32)
    seq_lengths = jnp.array([T, 5], dtype=jnp.int32)

    fwd = jax.jit(functools.partial(second_lstm_forward, params))
    out = jax.block_until_ready(fwd(seq_lengths, inputs))

    ref = jax.block_until_ready(ref_forward(params, seq_lengths, inputs))
    assert out.shape == (B, T, 2 * H)
    np.testing.assert_allclose(np.asarray(out), np.asarray(ref), atol=1e-2, rtol=1e-2)

    print("KERNEL_OK")
</pallas_src>

<mosaic_0001>
module attributes {stable_mosaic.version = 11 : i64} {
  func.func @_bilstm_fused_kernel(%arg0: i32, %arg1: memref<2x1xi32, #tpu.memory_space<vmem>>, %arg2: memref<16x64xf32, #tpu.memory_space<vmem>>, %arg3: memref<16x64xf32, #tpu.memory_space<vmem>>, %arg4: memref<64x256xf32, #tpu.memory_space<vmem>>, %arg5: memref<64x256xf32, #tpu.memory_space<vmem>>, %arg6: memref<64x256xf32, #tpu.memory_space<vmem>>, %arg7: memref<1x256xf32, #tpu.memory_space<vmem>>, %arg8: memref<16x32xf32, #tpu.memory_space<vmem>>, %arg9: memref<16x32xf32, #tpu.memory_space<vmem>>, %arg10: memref<2x64xf32, #tpu.memory_space<vmem>>, %arg11: memref<2x64xf32, #tpu.memory_space<vmem>>) attributes {dimension_semantics = [#tpu.dimension_semantics<arbitrary>], iteration_bounds = array<i64: 1>, scalar_prefetch = 0 : i64, scratch_operands = 2 : i64, tpu.core_type = #tpu.core_type<tc>, window_params = [{pipeline_mode = #tpu.pipeline_mode<synchronous>, transform_indices = @transform_0, window_bounds = array<i64: 2, 1>}, {transform_indices = @transform_1, window_bounds = array<i64: 16, 64>}, {transform_indices = @transform_2, window_bounds = array<i64: 16, 64>}, {pipeline_mode = #tpu.pipeline_mode<synchronous>, transform_indices = @transform_3, window_bounds = array<i64: 64, 256>}, {pipeline_mode = #tpu.pipeline_mode<synchronous>, transform_indices = @transform_4, window_bounds = array<i64: 64, 256>}, {pipeline_mode = #tpu.pipeline_mode<synchronous>, transform_indices = @transform_5, window_bounds = array<i64: 64, 256>}, {pipeline_mode = #tpu.pipeline_mode<synchronous>, transform_indices = @transform_6, window_bounds = array<i64: 1, 256>}, {transform_indices = @transform_7, window_bounds = array<i64: 16, 32>}, {transform_indices = @transform_8, window_bounds = array<i64: 16, 32>}]} {
    %c0_i32 = arith.constant 0 : i32
    %0 = arith.cmpi eq, %arg0, %c0_i32 : i32
    %1 = arith.extui %0 : i1 to i32
    %c0_i32_0 = arith.constant 0 : i32
    %2 = arith.cmpi ne, %1, %c0_i32_0 : i32
    scf.if %2 {
      %cst_88 = arith.constant 0.000000e+00 : f32
      %311 = vector.broadcast %cst_88 : f32 to vector<2x64xf32>
      %c0_89 = arith.constant 0 : index
      %c0_90 = arith.constant 0 : index
      %312 = vector.load %arg10[%c0_89, %c0_90] : memref<2x64xf32, #tpu.memory_space<vmem>>, vector<2x64xf32>
      tpu.vector_store %arg10[%c0_89, %c0_90], %311 {strides = array<i32>} : memref<2x64xf32, #tpu.memory_space<vmem>>, vector<2x64xf32>,
      %cst_91 = arith.constant 0.000000e+00 : f32
      %313 = vector.broadcast %cst_91 : f32 to vector<2x64xf32>
      %c0_92 = arith.constant 0 : index
      %c0_93 = arith.constant 0 : index
      %314 = vector.load %arg11[%c0_92, %c0_93] : memref<2x64xf32, #tpu.memory_space<vmem>>, vector<2x64xf32>
      tpu.vector_store %arg11[%c0_92, %c0_93], %313 {strides = array<i32>} : memref<2x64xf32, #tpu.memory_space<vmem>>, vector<2x64xf32>,
    } else {
    }
    %c0 = arith.constant 0 : index
    %c0_1 = arith.constant 0 : index
    %3 = vector.load %arg2[%c0, %c0_1] : memref<16x64xf32, #tpu.memory_space<vmem>>, vector<16x64xf32>
    %c0_2 = arith.constant 0 : index
    %c0_3 = arith.constant 0 : index
    %4 = vector.load %arg4[%c0_2, %c0_3] : memref<64x256xf32, #tpu.memory_space<vmem>>, vector<64x256xf32>
    %cst = arith.constant dense<0.000000e+00> : vector<16x256xf32>
    %5 = tpu.matmul %3, %4, %cst {dimension_numbers = #tpu.dot_dimension_numbers<[1], [0], [0], [1], [0, 0, 1, 1], [], []>} : vector<16x64xf32>, vector<64x256xf32>, vector<16x256xf32> -> vector<16x256xf32>
    %c0_4 = arith.constant 0 : index
    %c0_5 = arith.constant 0 : index
    %6 = vector.load %arg7[%c0_4, %c0_5] : memref<1x256xf32, #tpu.memory_space<vmem>>, vector<1x256xf32>
    %7 = vector.broadcast %6 : vector<1x256xf32> to vector<16x256xf32>
    %8 = arith.addf %5, %7 : vector<16x256xf32>
    %c0_6 = arith.constant 0 : index
    %c0_7 = arith.constant 0 : index
    %9 = vector.load %arg3[%c0_6, %c0_7] : memref<16x64xf32, #tpu.memory_space<vmem>>, vector<16x64xf32>
    %c0_8 = arith.constant 0 : index
    %c0_9 = arith.constant 0 : index
    %10 = vector.load %arg5[%c0_8, %c0_9] : memref<64x256xf32, #tpu.memory_space<vmem>>, vector<64x256xf32>
    %cst_10 = arith.constant dense<0.000000e+00> : vector<16x256xf32>
    %11 = tpu.matmul %9, %10, %cst_10 {dimension_numbers = #tpu.dot_dimension_numbers<[1], [0], [0], [1], [0, 0, 1, 1], [], []>} : vector<16x64xf32>, vector<64x256xf32>, vector<16x256xf32> -> vector<16x256xf32>
    %c0_11 = arith.constant 0 : index
    %c0_12 = arith.constant 0 : index
    %12 = vector.load %arg6[%c0_11, %c0_12] : memref<64x256xf32, #tpu.memory_space<vmem>>, vector<64x256xf32>
    %c0_13 = arith.constant 0 : index
    %c0_14 = arith.constant 0 : index
    %13 = vector.load %arg1[%c0_13, %c0_14] : memref<2x1xi32, #tpu.memory_space<vmem>>, vector<2x1xi32>
    %14 = vector.shape_cast %13 : vector<2x1xi32> to vector<2x1xi32>
    %15 = vector.broadcast %14 : vector<2x1xi32> to vector<2x64xi32>
    %16 = tpu.iota {dimensions = array<i32: 1>} : vector<2x64xi32>
    %c32_i32 = arith.constant 32 : i32
    %17 = vector.broadcast %c32_i32 : i32 to vector<2x64xi32>
    %18 = arith.cmpi slt, %16, %17 : vector<2x64xi32>
    %c0_15 = arith.constant 0 : index
    %c0_16 = arith.constant 0 : index
    %19 = vector.load %arg10[%c0_15, %c0_16] : memref<2x64xf32, #tpu.memory_space<vmem>>, vector<2x64xf32>
    %c0_17 = arith.constant 0 : index
    %c0_18 = arith.constant 0 : index
    %20 = vector.load %arg11[%c0_17, %c0_18] : memref<2x64xf32, #tpu.memory_space<vmem>>, vector<2x64xf32>
    %c8_i32 = arith.constant 8 : i32
    %21 = arith.muli %arg0, %c8_i32 : i32
    %c0_i32_19 = arith.constant 0 : i32
    %22 = arith.addi %21, %c0_i32_19 : i32
    %c7_i32 = arith.constant 7 : i32
    %23 = arith.subi %c7_i32, %22 : i32
    %24 = vector.broadcast %22 : i32 to vector<2x64xi32>
    %25 = vector.broadcast %23 : i32 to vector<2x64xi32>
    %26 = arith.select %18, %24, %25 : vector<2x64xi1>, vector<2x64xi32>
    %27 = arith.cmpi slt, %26, %15 : vector<2x64xi32>
    %cst_20 = arith.constant dense<0.000000e+00> : vector<2x256xf32>
    %28 = tpu.matmul %19, %12, %cst_20 {dimension_numbers = #tpu.dot_dimension_numbers<[1], [0], [0], [1], [0, 0, 1, 1], [], []>} : vector<2x64xf32>, vector<64x256xf32>, vector<2x256xf32> -> vector<2x256xf32>
    %29 = vector.extract_strided_slice %8 {offsets = [0, 0], sizes = [2, 256], strides = [1, 1]} : vector<16x256xf32> to vector<2x256xf32>
    %30 = vector.extract_strided_slice %11 {offsets = [14, 0], sizes = [2, 256], strides = [1, 1]} : vector<16x256xf32> to vector<2x256xf32>
    %31 = arith.addf %29, %30 : vector<2x256xf32>
    %32 = arith.addf %31, %28 : vector<2x256xf32>
    %33 = vector.extract_strided_slice %32 {offsets = [0, 0], sizes = [2, 192], strides = [1, 1]} : vector<2x256xf32> to vector<2x192xf32>
    %34 = arith.negf %33 : vector<2x192xf32>
    %35 = math.exp %34 : vector<2x192xf32>
    %cst_21 = arith.constant 1.000000e+00 : f32
    %36 = vector.broadcast %cst_21 : f32 to vector<2x192xf32>
    %37 = arith.addf %36, %35 : vector<2x192xf32>
    %38 = arith.divf %36, %37 : vector<2x192xf32>
    %39 = vector.extract_strided_slice %32 {offsets = [0, 192], sizes = [2, 64], strides = [1, 1]} : vector<2x256xf32> to vector<2x64xf32>
    %40 = math.tanh %39 : vector<2x64xf32>
    %41 = vector.extract_strided_slice %38 {offsets = [0, 0], sizes = [2, 64], strides = [1, 1]} : vector<2x192xf32> to vector<2x64xf32>
    %42 = vector.extract_strided_slice %38 {offsets = [0, 64], sizes = [2, 64], strides = [1, 1]} : vector<2x192xf32> to vector<2x64xf32>
    %43 = vector.extract_strided_slice %38 {offsets = [0, 128], sizes = [2, 64], strides = [1, 1]} : vector<2x192xf32> to vector<2x64xf32>
    %44 = arith.mulf %42, %20 : vector<2x64xf32>
    %45 = arith.mulf %41, %40 : vector<2x64xf32>
    %46 = arith.addf %44, %45 : vector<2x64xf32>
    %47 = math.tanh %46 : vector<2x64xf32>
    %48 = arith.mulf %43, %47 : vector<2x64xf32>
    %cst_22 = arith.constant 0.000000e+00 : f32
    %49 = vector.broadcast %cst_22 : f32 to vector<2x64xf32>
    %50 = arith.select %27, %48, %49 : vector<2x64xi1>, vector<2x64xf32>
    %51 = vector.extract_strided_slice %50 {offsets = [0, 0], sizes = [2, 32], strides = [1, 1]} : vector<2x64xf32> to vector<2x32xf32>
    %c0_23 = arith.constant 0 : index
    %c0_24 = arith.constant 0 : index
    %52 = vector.load %arg8[%c0_23, %c0_24] : memref<16x32xf32, #tpu.memory_space<vmem>>, vector<2x32xf32>
    tpu.vector_store %arg8[%c0_23, %c0_24], %51 {strides = array<i32>} : memref<16x32xf32, #tpu.memory_space<vmem>>, vector<2x32xf32>,
    %53 = vector.extract_strided_slice %50 {offsets = [0, 32], sizes = [2, 32], strides = [1, 1]} : vector<2x64xf32> to vector<2x32xf32>
    %c14 = arith.constant 14 : index
    %c0_25 = arith.constant 0 : index
    %54 = vector.load %arg9[%c14, %c0_25] : memref<16x32xf32, #tpu.memory_space<vmem>>, vector<2x32xf32>
    tpu.vector_store %arg9[%c14, %c0_25], %53 {strides = array<i32>} : memref<16x32xf32, #tpu.memory_space<vmem>>, vector<2x32xf32>,
    %55 = arith.select %27, %48, %19 : vector<2x64xi1>, vector<2x64xf32>
    %56 = arith.select %27, %46, %20 : vector<2x64xi1>, vector<2x64xf32>
    %c8_i32_26 = arith.constant 8 : i32
    %57 = arith.muli %arg0, %c8_i32_26 : i32
    %c1_i32 = arith.constant 1 : i32
    %58 = arith.addi %57, %c1_i32 : i32
    %c7_i32_27 = arith.constant 7 : i32
    %59 = arith.subi %c7_i32_27, %58 : i32
    %60 = vector.broadcast %58 : i32 to vector<2x64xi32>
    %61 = vector.broadcast %59 : i32 to vector<2x64xi32>
    %62 = arith.select %18, %60, %61 : vector<2x64xi1>, vector<2x64xi32>
    %63 = arith.cmpi slt, %62, %15 : vector<2x64xi32>
    %cst_28 = arith.constant dense<0.000000e+00> : vector<2x256xf32>
    %64 = tpu.matmul %55, %12, %cst_28 {dimension_numbers = #tpu.dot_dimension_numbers<[1], [0], [0], [1], [0, 0, 1, 1], [], []>} : vector<2x64xf32>, vector<64x256xf32>, vector<2x256xf32> -> vector<2x256xf32>
    %65 = vector.extract_strided_slice %8 {offsets = [2, 0], sizes = [2, 256], strides = [1, 1]} : vector<16x256xf32> to vector<2x256xf32>
    %66 = vector.extract_strided_slice %11 {offsets = [12, 0], sizes = [2, 256], strides = [1, 1]} : vector<16x256xf32> to vector<2x256xf32>
    %67 = arith.addf %65, %66 : vector<2x256xf32>
    %68 = arith.addf %67, %64 : vector<2x256xf32>
    %69 = vector.extract_strided_slice %68 {offsets = [0, 0], sizes = [2, 192], strides = [1, 1]} : vector<2x256xf32> to vector<2x192xf32>
    %70 = arith.negf %69 : vector<2x192xf32>
    %71 = math.exp %70 : vector<2x192xf32>
    %cst_29 = arith.constant 1.000000e+00 : f32
    %72 = vector.broadcast %cst_29 : f32 to vector<2x192xf32>
    %73 = arith.addf %72, %71 : vector<2x192xf32>
    %74 = arith.divf %72, %73 : vector<2x192xf32>
    %75 = vector.extract_strided_slice %68 {offsets = [0, 192], sizes = [2, 64], strides = [1, 1]} : vector<2x256xf32> to vector<2x64xf32>
    %76 = math.tanh %75 : vector<2x64xf32>
    %77 = vector.extract_strided_slice %74 {offsets = [0, 0], sizes = [2, 64], strides = [1, 1]} : vector<2x192xf32> to vector<2x64xf32>
    %78 = vector.extract_strided_slice %74 {offsets = [0, 64], sizes = [2, 64], strides = [1, 1]} : vector<2x192xf32> to vector<2x64xf32>
    %79 = vector.extract_strided_slice %74 {offsets = [0, 128], sizes = [2, 64], strides = [1, 1]} : vector<2x192xf32> to vector<2x64xf32>
    %80 = arith.mulf %78, %56 : vector<2x64xf32>
    %81 = arith.mulf %77, %76 : vector<2x64xf32>
    %82 = arith.addf %80, %81 : vector<2x64xf32>
    %83 = math.tanh %82 : vector<2x64xf32>
    %84 = arith.mulf %79, %83 : vector<2x64xf32>
    %cst_30 = arith.constant 0.000000e+00 : f32
    %85 = vector.broadcast %cst_30 : f32 to vector<2x64xf32>
    %86 = arith.select %63, %84, %85 : vector<2x64xi1>, vector<2x64xf32>
    %87 = vector.extract_strided_slice %86 {offsets = [0, 0], sizes = [2, 32], strides = [1, 1]} : vector<2x64xf32> to vector<2x32xf32>
    %c2 = arith.constant 2 : index
    %c0_31 = arith.constant 0 : index
    %88 = vector.load %arg8[%c2, %c0_31] : memref<16x32xf32, #tpu.memory_space<vmem>>, vector<2x32xf32>
    tpu.vector_store %arg8[%c2, %c0_31], %87 {strides = array<i32>} : memref<16x32xf32, #tpu.memory_space<vmem>>, vector<2x32xf32>,
    %89 = vector.extract_strided_slice %86 {offsets = [0, 32], sizes = [2, 32], strides = [1, 1]} : vector<2x64xf32> to vector<2x32xf32>
    %c12 = arith.constant 12 : index
    %c0_32 = arith.constant 0 : index
    %90 = vector.load %arg9[%c12, %c0_32] : memref<16x32xf32, #tpu.memory_space<vmem>>, vector<2x32xf32>
    tpu.vector_store %arg9[%c12, %c0_32], %89 {strides = array<i32>} : memref<16x32xf32, #tpu.memory_space<vmem>>, vector<2x32xf32>,
    %91 = arith.select %63, %84, %55 : vector<2x64xi1>, vector<2x64xf32>
    %92 = arith.select %63, %82, %56 : vector<2x64xi1>, vector<2x64xf32>
    %c8_i32_33 = arith.constant 8 : i32
    %93 = arith.muli %arg0, %c8_i32_33 : i32
    %c2_i32 = arith.constant 2 : i32
    %94 = arith.addi %93, %c2_i32 : i32
    %c7_i32_34 = arith.constant 7 : i32
    %95 = arith.subi %c7_i32_34, %94 : i32
    %96 = vector.broadcast %94 : i32 to vector<2x64xi32>
    %97 = vector.broadcast %95 : i32 to vector<2x64xi32>
    %98 = arith.select %18, %96, %97 : vector<2x64xi1>, vector<2x64xi32>
    %99 = arith.cmpi slt, %98, %15 : vector<2x64xi32>
    %cst_35 = arith.constant dense<0.000000e+00> : vector<2x256xf32>
    %100 = tpu.matmul %91, %12, %cst_35 {dimension_numbers = #tpu.dot_dimension_numbers<[1], [0], [0], [1], [0, 0, 1, 1], [], []>} : vector<2x64xf32>, vector<64x256xf32>, vector<2x256xf32> -> vector<2x256xf32>
    %101 = vector.extract_strided_slice %8 {offsets = [4, 0], sizes = [2, 256], strides = [1, 1]} : vector<16x256xf32> to vector<2x256xf32>
    %102 = vector.extract_strided_slice %11 {offsets = [10, 0], sizes = [2, 256], strides = [1, 1]} : vector<16x256xf32> to vector<2x256xf32>
    %103 = arith.addf %101, %102 : vector<2x256xf32>
    %104 = arith.addf %103, %100 : vector<2x256xf32>
    %105 = vector.extract_strided_slice %104 {offsets = [0, 0], sizes = [2, 192], strides = [1, 1]} : vector<2x256xf32> to vector<2x192xf32>
    %106 = arith.negf %105 : vector<2x192xf32>
    %107 = math.exp %106 : vector<2x192xf32>
    %cst_36 = arith.constant 1.000000e+00 : f32
    %108 = vector.broadcast %cst_36 : f32 to vector<2x192xf32>
    %109 = arith.addf %108, %107 : vector<2x192xf32>
    %110 = arith.divf %108, %109 : vector<2x192xf32>
    %111 = vector.extract_strided_slice %104 {offsets = [0, 192], sizes = [2, 64], strides = [1, 1]} : vector<2x256xf32> to vector<2x64xf32>
    %112 = math.tanh %111 : vector<2x64xf32>
    %113 = vector.extract_strided_slice %110 {offsets = [0, 0], sizes = [2, 64], strides = [1, 1]} : vector<2x192xf32> to vector<2x64xf32>
    %114 = vector.extract_strided_slice %110 {offsets = [0, 64], sizes = [2, 64], strides = [1, 1]} : vector<2x192xf32> to vector<2x64xf32>
    %115 = vector.extract_strided_slice %110 {offsets = [0, 128], sizes = [2, 64], strides = [1, 1]} : vector<2x192xf32> to vector<2x64xf32>
    %116 = arith.mulf %114, %92 : vector<2x64xf32>
    %117 = arith.mulf %113, %112 : vector<2x64xf32>
    %118 = arith.addf %116, %117 : vector<2x64xf32>
    %119 = math.tanh %118 : vector<2x64xf32>
    %120 = arith.mulf %115, %119 : vector<2x64xf32>
    %cst_37 = arith.constant 0.000000e+00 : f32
    %121 = vector.broadcast %cst_37 : f32 to vector<2x64xf32>
    %122 = arith.select %99, %120, %121 : vector<2x64xi1>, vector<2x64xf32>
    %123 = vector.extract_strided_slice %122 {offsets = [0, 0], sizes = [2, 32], strides = [1, 1]} : vector<2x64xf32> to vector<2x32xf32>
    %c4 = arith.constant 4 : index
    %c0_38 = arith.constant 0 : index
    %124 = vector.load %arg8[%c4, %c0_38] : memref<16x32xf32, #tpu.memory_space<vmem>>, vector<2x32xf32>
    tpu.vector_store %arg8[%c4, %c0_38], %123 {strides = array<i32>} : memref<16x32xf32, #tpu.memory_space<vmem>>, vector<2x32xf32>,
    %125 = vector.extract_strided_slice %122 {offsets = [0, 32], sizes = [2, 32], strides = [1, 1]} : vector<2x64xf32> to vector<2x32xf32>
    %c10 = arith.constant 10 : index
    %c0_39 = arith.constant 0 : index
    %126 = vector.load %arg9[%c10, %c0_39] : memref<16x32xf32, #tpu.memory_space<vmem>>, vector<2x32xf32>
    tpu.vector_store %arg9[%c10, %c0_39], %125 {strides = array<i32>} : memref<16x32xf32, #tpu.memory_space<vmem>>, vector<2x32xf32>,
    %127 = arith.select %99, %120, %91 : vector<2x64xi1>, vector<2x64xf32>
    %128 = arith.select %99, %118, %92 : vector<2x64xi1>, vector<2x64xf32>
    %c8_i32_40 = arith.constant 8 : i32
    %129 = arith.muli %arg0, %c8_i32_40 : i32
    %c3_i32 = arith.constant 3 : i32
    %130 = arith.addi %129, %c3_i32 : i32
    %c7_i32_41 = arith.constant 7 : i32
    %131 = arith.subi %c7_i32_41, %130 : i32
    %132 = vector.broadcast %130 : i32 to vector<2x64xi32>
    %133 = vector.broadcast %131 : i32 to vector<2x64xi32>
    %134 = arith.select %18, %132, %133 : vector<2x64xi1>, vector<2x64xi32>
    %135 = arith.cmpi slt, %134, %15 : vector<2x64xi32>
    %cst_42 = arith.constant dense<0.000000e+00> : vector<2x256xf32>
    %136 = tpu.matmul %127, %12, %cst_42 {dimension_numbers = #tpu.dot_dimension_numbers<[1], [0], [0], [1], [0, 0, 1, 1], [], []>} : vector<2x64xf32>, vector<64x256xf32>, vector<2x256xf32> -> vector<2x256xf32>
    %137 = vector.extract_strided_slice %8 {offsets = [6, 0], sizes = [2, 256], strides = [1, 1]} : vector<16x256xf32> to vector<2x256xf32>
    %138 = vector.extract_strided_slice %11 {offsets = [8, 0], sizes = [2, 256], strides = [1, 1]} : vector<16x256xf32> to vector<2x256xf32>
    %139 = arith.addf %137, %138 : vector<2x256xf32>
    %140 = arith.addf %139, %136 : vector<2x256xf32>
    %141 = vector.extract_strided_slice %140 {offsets = [0, 0], sizes = [2, 192], strides = [1, 1]} : vector<2x256xf32> to vector<2x192xf32>
    %142 = arith.negf %141 : vector<2x192xf32>
    %143 = math.exp %142 : vector<2x192xf32>
    %cst_43 = arith.constant 1.000000e+00 : f32
    %144 = vector.broadcast %cst_43 : f32 to vector<2x192xf32>
    %145 = arith.addf %144, %143 : vector<2x192xf32>
    %146 = arith.divf %144, %145 : vector<2x192xf32>
    %147 = vector.extract_strided_slice %140 {offsets = [0, 192], sizes = [2, 64], strides = [1, 1]} : vector<2x256xf32> to vector<2x64xf32>
    %148 = math.tanh %147 : vector<2x64xf32>
    %149 = vector.extract_strided_slice %146 {offsets = [0, 0], sizes = [2, 64], strides = [1, 1]} : vector<2x192xf32> to vector<2x64xf32>
    %150 = vector.extract_strided_slice %146 {offsets = [0, 64], sizes = [2, 64], strides = [1, 1]} : vector<2x192xf32> to vector<2x64xf32>
    %151 = vector.extract_strided_slice %146 {offsets = [0, 128], sizes = [2, 64], strides = [1, 1]} : vector<2x192xf32> to vector<2x64xf32>
    %152 = arith.mulf %150, %128 : vector<2x64xf32>
    %153 = arith.mulf %149, %148 : vector<2x64xf32>
    %154 = arith.addf %152, %153 : vector<2x64xf32>
    %155 = math.tanh %154 : vector<2x64xf32>
    %156 = arith.mulf %151, %155 : vector<2x64xf32>
    %cst_44 = arith.constant 0.000000e+00 : f32
    %157 = vector.broadcast %cst_44 : f32 to vector<2x64xf32>
    %158 = arith.select %135, %156, %157 : vector<2x64xi1>, vector<2x64xf32>
    %159 = vector.extract_strided_slice %158 {offsets = [0, 0], sizes = [2, 32], strides = [1, 1]} : vector<2x64xf32> to vector<2x32xf32>
    %c6 = arith.constant 6 : index
    %c0_45 = arith.constant 0 : index
    %160 = vector.load %arg8[%c6, %c0_45] : memref<16x32xf32, #tpu.memory_space<vmem>>, vector<2x32xf32>
    tpu.vector_store %arg8[%c6, %c0_45], %159 {strides = array<i32>} : memref<16x32xf32, #tpu.memory_space<vmem>>, vector<2x32xf32>,
    %161 = vector.extract_strided_slice %158 {offsets = [0, 32], sizes = [2, 32], strides = [1, 1]} : vector<2x64xf32> to vector<2x32xf32>
    %c8 = arith.constant 8 : index
    %c0_46 = arith.constant 0 : index
    %162 = vector.load %arg9[%c8, %c0_46] : memref<16x32xf32, #tpu.memory_space<vmem>>, vector<2x32xf32>
    tpu.vector_store %arg9[%c8, %c0_46], %161 {strides = array<i32>} : memref<16x32xf32, #tpu.memory_space<vmem>>, vector<2x32xf32>,
    %163 = arith.select %135, %156, %127 : vector<2x64xi1>, vector<2x64xf32>
    %164 = arith.select %135, %154, %128 : vector<2x64xi1>, vector<2x64xf32>
    %c8_i32_47 = arith.constant 8 : i32
    %165 = arith.muli %arg0, %c8_i32_47 : i32
    %c4_i32 = arith.constant 4 : i32
    %166 = arith.addi %165, %c4_i32 : i32
    %c7_i32_48 = arith.constant 7 : i32
    %167 = arith.subi %c7_i32_48, %166 : i32
    %168 = vector.broadcast %166 : i32 to vector<2x64xi32>
    %169 = vector.broadcast %167 : i32 to vector<2x64xi32>
    %170 = arith.select %18, %168, %169 : vector<2x64xi1>, vector<2x64xi32>
    %171 = arith.cmpi slt, %170, %15 : vector<2x64xi32>
    %cst_49 = arith.constant dense<0.000000e+00> : vector<2x256xf32>
    %172 = tpu.matmul %163, %12, %cst_49 {dimension_numbers = #tpu.dot_dimension_numbers<[1], [0], [0], [1], [0, 0, 1, 1], [], []>} : vector<2x64xf32>, vector<64x256xf32>, vector<2x256xf32> -> vector<2x256xf32>
    %173 = vector.extract_strided_slice %8 {offsets = [8, 0], sizes = [2, 256], strides = [1, 1]} : vector<16x256xf32> to vector<2x256xf32>
    %174 = vector.extract_strided_slice %11 {offsets = [6, 0], sizes = [2, 256], strides = [1, 1]} : vector<16x256xf32> to vector<2x256xf32>
    %175 = arith.addf %173, %174 : vector<2x256xf32>
    %176 = arith.addf %175, %172 : vector<2x256xf32>
    %177 = vector.extract_strided_slice %176 {offsets = [0, 0], sizes = [2, 192], strides = [1, 1]} : vector<2x256xf32> to vector<2x192xf32>
    %178 = arith.negf %177 : vector<2x192xf32>
    %179 = math.exp %178 : vector<2x192xf32>
    %cst_50 = arith.constant 1.000000e+00 : f32
    %180 = vector.broadcast %cst_50 : f32 to vector<2x192xf32>
    %181 = arith.addf %180, %179 : vector<2x192xf32>
    %182 = arith.divf %180, %181 : vector<2x192xf32>
    %183 = vector.extract_strided_slice %176 {offsets = [0, 192], sizes = [2, 64], strides = [1, 1]} : vector<2x256xf32> to vector<2x64xf32>
    %184 = math.tanh %183 : vector<2x64xf32>
    %185 = vector.extract_strided_slice %182 {offsets = [0, 0], sizes = [2, 64], strides = [1, 1]} : vector<2x192xf32> to vector<2x64xf32>
    %186 = vector.extract_strided_slice %182 {offsets = [0, 64], sizes = [2, 64], strides = [1, 1]} : vector<2x192xf32> to vector<2x64xf32>
    %187 = vector.extract_strided_slice %182 {offsets = [0, 128], sizes = [2, 64], strides = [1, 1]} : vector<2x192xf32> to vector<2x64xf32>
    %188 = arith.mulf %186, %164 : vector<2x64xf32>
    %189 = arith.mulf %185, %184 : vector<2x64xf32>
    %190 = arith.addf %188, %189 : vector<2x64xf32>
    %191 = math.tanh %190 : vector<2x64xf32>
    %192 = arith.mulf %187, %191 : vector<2x64xf32>
    %cst_51 = arith.constant 0.000000e+00 : f32
    %193 = vector.broadcast %cst_51 : f32 to vector<2x64xf32>
    %194 = arith.select %171, %192, %193 : vector<2x64xi1>, vector<2x64xf32>
    %195 = vector.extract_strided_slice %194 {offsets = [0, 0], sizes = [2, 32], strides = [1, 1]} : vector<2x64xf32> to vector<2x32xf32>
    %c8_52 = arith.constant 8 : index
    %c0_53 = arith.constant 0 : index
    %196 = vector.load %arg8[%c8_52, %c0_53] : memref<16x32xf32, #tpu.memory_space<vmem>>, vector<2x32xf32>
    tpu.vector_store %arg8[%c8_52, %c0_53], %195 {strides = array<i32>} : memref<16x32xf32, #tpu.memory_space<vmem>>, vector<2x32xf32>,
    %197 = vector.extract_strided_slice %194 {offsets = [0, 32], sizes = [2, 32], strides = [1, 1]} : vector<2x64xf32> to vector<2x32xf32>
    %c6_54 = arith.constant 6 : index
    %c0_55 = arith.constant 0 : index
    %198 = vector.load %arg9[%c6_54, %c0_55] : memref<16x32xf32, #tpu.memory_space<vmem>>, vector<2x32xf32>
    tpu.vector_store %arg9[%c6_54, %c0_55], %197 {strides = array<i32>} : memref<16x32xf32, #tpu.memory_space<vmem>>, vector<2x32xf32>,
    %199 = arith.select %171, %192, %163 : vector<2x64xi1>, vector<2x64xf32>
    %200 = arith.select %171, %190, %164 : vector<2x64xi1>, vector<2x64xf32>
    %c8_i32_56 = arith.constant 8 : i32
    %201 = arith.muli %arg0, %c8_i32_56 : i32
    %c5_i32 = arith.constant 5 : i32
    %202 = arith.addi %201, %c5_i32 : i32
    %c7_i32_57 = arith.constant 7 : i32
    %203 = arith.subi %c7_i32_57, %202 : i32
    %204 = vector.broadcast %202 : i32 to vector<2x64xi32>
    %205 = vector.broadcast %203 : i32 to vector<2x64xi32>
    %206 = arith.select %18, %204, %205 : vector<2x64xi1>, vector<2x64xi32>
    %207 = arith.cmpi slt, %206, %15 : vector<2x64xi32>
    %cst_58 = arith.constant dense<0.000000e+00> : vector<2x256xf32>
    %208 = tpu.matmul %199, %12, %cst_58 {dimension_numbers = #tpu.dot_dimension_numbers<[1], [0], [0], [1], [0, 0, 1, 1], [], []>} : vector<2x64xf32>, vector<64x256xf32>, vector<2x256xf32> -> vector<2x256xf32>
    %209 = vector.extract_strided_slice %8 {offsets = [10, 0], sizes = [2, 256], strides = [1, 1]} : vector<16x256xf32> to vector<2x256xf32>
    %210 = vector.extract_strided_slice %11 {offsets = [4, 0], sizes = [2, 256], strides = [1, 1]} : vector<16x256xf32> to vector<2x256xf32>
    %211 = arith.addf %209, %210 : vector<2x256xf32>
    %212 = arith.addf %211, %208 : vector<2x256xf32>
    %213 = vector.extract_strided_slice %212 {offsets = [0, 0], sizes = [2, 192], strides = [1, 1]} : vector<2x256xf32> to vector<2x192xf32>
    %214 = arith.negf %213 : vector<2x192xf32>
    %215 = math.exp %214 : vector<2x192xf32>
    %cst_59 = arith.constant 1.000000e+00 : f32
    %216 = vector.broadcast %cst_59 : f32 to vector<2x192xf32>
    %217 = arith.addf %216, %215 : vector<2x192xf32>
    %218 = arith.divf %216, %217 : vector<2x192xf32>
    %219 = vector.extract_strided_slice %212 {offsets = [0, 192], sizes = [2, 64], strides = [1, 1]} : vector<2x256xf32> to vector<2x64xf32>
    %220 = math.tanh %219 : vector<2x64xf32>
    %221 = vector.extract_strided_slice %218 {offsets = [0, 0], sizes = [2, 64], strides = [1, 1]} : vector<2x192xf32> to vector<2x64xf32>
    %222 = vector.extract_strided_slice %218 {offsets = [0, 64], sizes = [2, 64], strides = [1, 1]} : vector<2x192xf32> to vector<2x64xf32>
    %223 = vector.extract_strided_slice %218 {offsets = [0, 128], sizes = [2, 64], strides = [1, 1]} : vector<2x192xf32> to vector<2x64xf32>
    %224 = arith.mulf %222, %200 : vector<2x64xf32>
    %225 = arith.mulf %221, %220 : vector<2x64xf32>
    %226 = arith.addf %224, %225 : vector<2x64xf32>
    %227 = math.tanh %226 : vector<2x64xf32>
    %228 = arith.mulf %223, %227 : vector<2x64xf32>
    %cst_60 = arith.constant 0.000000e+00 : f32
    %229 = vector.broadcast %cst_60 : f32 to vector<2x64xf32>
    %230 = arith.select %207, %228, %229 : vector<2x64xi1>, vector<2x64xf32>
    %231 = vector.extract_strided_slice %230 {offsets = [0, 0], sizes = [2, 32], strides = [1, 1]} : vector<2x64xf32> to vector<2x32xf32>
    %c10_61 = arith.constant 10 : index
    %c0_62 = arith.constant 0 : index
    %232 = vector.load %arg8[%c10_61, %c0_62] : memref<16x32xf32, #tpu.memory_space<vmem>>, vector<2x32xf32>
    tpu.vector_store %arg8[%c10_61, %c0_62], %231 {strides = array<i32>} : memref<16x32xf32, #tpu.memory_space<vmem>>, vector<2x32xf32>,
    %233 = vector.extract_strided_slice %230 {offsets = [0, 32], sizes = [2, 32], strides = [1, 1]} : vector<2x64xf32> to vector<2x32xf32>
    %c4_63 = arith.constant 4 : index
    %c0_64 = arith.constant 0 : index
    %234 = vector.load %arg9[%c4_63, %c0_64] : memref<16x32xf32, #tpu.memory_space<vmem>>, vector<2x32xf32>
    tpu.vector_store %arg9[%c4_63, %c0_64], %233 {strides = array<i32>} : memref<16x32xf32, #tpu.memory_space<vmem>>, vector<2x32xf32>,
    %235 = arith.select %207, %228, %199 : vector<2x64xi1>, vector<2x64xf32>
    %236 = arith.select %207, %226, %200 : vector<2x64xi1>, vector<2x64xf32>
    %c8_i32_65 = arith.constant 8 : i32
    %237 = arith.muli %arg0, %c8_i32_65 : i32
    %c6_i32 = arith.constant 6 : i32
    %238 = arith.addi %237, %c6_i32 : i32
    %c7_i32_66 = arith.constant 7 : i32
    %239 = arith.subi %c7_i32_66, %238 : i32
    %240 = vector.broadcast %238 : i32 to vector<2x64xi32>
    %241 = vector.broadcast %239 : i32 to vector<2x64xi32>
    %242 = arith.select %18, %240, %241 : vector<2x64xi1>, vector<2x64xi32>
    %243 = arith.cmpi slt, %242, %15 : vector<2x64xi32>
    %cst_67 = arith.constant dense<0.000000e+00> : vector<2x256xf32>
    %244 = tpu.matmul %235, %12, %cst_67 {dimension_numbers = #tpu.dot_dimension_numbers<[1], [0], [0], [1], [0, 0, 1, 1], [], []>} : vector<2x64xf32>, vector<64x256xf32>, vector<2x256xf32> -> vector<2x256xf32>
    %245 = vector.extract_strided_slice %8 {offsets = [12, 0], sizes = [2, 256], strides = [1, 1]} : vector<16x256xf32> to vector<2x256xf32>
    %246 = vector.extract_strided_slice %11 {offsets = [2, 0], sizes = [2, 256], strides = [1, 1]} : vector<16x256xf32> to vector<2x256xf32>
    %247 = arith.addf %245, %246 : vector<2x256xf32>
    %248 = arith.addf %247, %244 : vector<2x256xf32>
    %249 = vector.extract_strided_slice %248 {offsets = [0, 0], sizes = [2, 192], strides = [1, 1]} : vector<2x256xf32> to vector<2x192xf32>
    %250 = arith.negf %249 : vector<2x192xf32>
    %251 = math.exp %250 : vector<2x192xf32>
    %cst_68 = arith.constant 1.000000e+00 : f32
    %252 = vector.broadcast %cst_68 : f32 to vector<2x192xf32>
    %253 = arith.addf %252, %251 : vector<2x192xf32>
    %254 = arith.divf %252, %253 : vector<2x192xf32>
    %255 = vector.extract_strided_slice %248 {offsets = [0, 192], sizes = [2, 64], strides = [1, 1]} : vector<2x256xf32> to vector<2x64xf32>
    %256 = math.tanh %255 : vector<2x64xf32>
    %257 = vector.extract_strided_slice %254 {offsets = [0, 0], sizes = [2, 64], strides = [1, 1]} : vector<2x192xf32> to vector<2x64xf32>
    %258 = vector.extract_strided_slice %254 {offsets = [0, 64], sizes = [2, 64], strides = [1, 1]} : vector<2x192xf32> to vector<2x64xf32>
    %259 = vector.extract_strided_slice %254 {offsets = [0, 128], sizes = [2, 64], strides = [1, 1]} : vector<2x192xf32> to vector<2x64xf32>
    %260 = arith.mulf %258, %236 : vector<2x64xf32>
    %261 = arith.mulf %257, %256 : vector<2x64xf32>
    %262 = arith.addf %260, %261 : vector<2x64xf32>
    %263 = math.tanh %262 : vector<2x64xf32>
    %264 = arith.mulf %259, %263 : vector<2x64xf32>
    %cst_69 = arith.constant 0.000000e+00 : f32
    %265 = vector.broadcast %cst_69 : f32 to vector<2x64xf32>
    %266 = arith.select %243, %264, %265 : vector<2x64xi1>, vector<2x64xf32>
    %267 = vector.extract_strided_slice %266 {offsets = [0, 0], sizes = [2, 32], strides = [1, 1]} : vector<2x64xf32> to vector<2x32xf32>
    %c12_70 = arith.constant 12 : index
    %c0_71 = arith.constant 0 : index
    %268 = vector.load %arg8[%c12_70, %c0_71] : memref<16x32xf32, #tpu.memory_space<vmem>>, vector<2x32xf32>
    tpu.vector_store %arg8[%c12_70, %c0_71], %267 {strides = array<i32>} : memref<16x32xf32, #tpu.memory_space<vmem>>, vector<2x32xf32>,
    %269 = vector.extract_strided_slice %266 {offsets = [0, 32], sizes = [2, 32], strides = [1, 1]} : vector<2x64xf32> to vector<2x32xf32>
    %c2_72 = arith.constant 2 : index
    %c0_73 = arith.constant 0 : index
    %270 = vector.load %arg9[%c2_72, %c0_73] : memref<16x32xf32, #tpu.memory_space<vmem>>, vector<2x32xf32>
    tpu.vector_store %arg9[%c2_72, %c0_73], %269 {strides = array<i32>} : memref<16x32xf32, #tpu.memory_space<vmem>>, vector<2x32xf32>,
    %271 = arith.select %243, %264, %235 : vector<2x64xi1>, vector<2x64xf32>
    %272 = arith.select %243, %262, %236 : vector<2x64xi1>, vector<2x64xf32>
    %c8_i32_74 = arith.constant 8 : i32
    %273 = arith.muli %arg0, %c8_i32_74 : i32
    %c7_i32_75 = arith.constant 7 : i32
    %274 = arith.addi %273, %c7_i32_75 : i32
    %c7_i32_76 = arith.constant 7 : i32
    %275 = arith.subi %c7_i32_76, %274 : i32
    %276 = vector.broadcast %274 : i32 to vector<2x64xi32>
    %277 = vector.broadcast %275 : i32 to vector<2x64xi32>
    %278 = arith.select %18, %276, %277 : vector<2x64xi1>, vector<2x64xi32>
    %279 = arith.cmpi slt, %278, %15 : vector<2x64xi32>
    %cst_77 = arith.constant dense<0.000000e+00> : vector<2x256xf32>
    %280 = tpu.matmul %271, %12, %cst_77 {dimension_numbers = #tpu.dot_dimension_numbers<[1], [0], [0], [1], [0, 0, 1, 1], [], []>} : vector<2x64xf32>, vector<64x256xf32>, vector<2x256xf32> -> vector<2x256xf32>
    %281 = vector.extract_strided_slice %8 {offsets = [14, 0], sizes = [2, 256], strides = [1, 1]} : vector<16x256xf32> to vector<2x256xf32>
    %282 = vector.extract_strided_slice %11 {offsets = [0, 0], sizes = [2, 256], strides = [1, 1]} : vector<16x256xf32> to vector<2x256xf32>
    %283 = arith.addf %281, %282 : vector<2x256xf32>
    %284 = arith.addf %283, %280 : vector<2x256xf32>
    %285 = vector.extract_strided_slice %284 {offsets = [0, 0], sizes = [2, 192], strides = [1, 1]} : vector<2x256xf32> to vector<2x192xf32>
    %286 = arith.negf %285 : vector<2x192xf32>
    %287 = math.exp %286 : vector<2x192xf32>
    %cst_78 = arith.constant 1.000000e+00 : f32
    %288 = vector.broadcast %cst_78 : f32 to vector<2x192xf32>
    %289 = arith.addf %288, %287 : vector<2x192xf32>
    %290 = arith.divf %288, %289 : vector<2x192xf32>
    %291 = vector.extract_strided_slice %284 {offsets = [0, 192], sizes = [2, 64], strides = [1, 1]} : vector<2x256xf32> to vector<2x64xf32>
    %292 = math.tanh %291 : vector<2x64xf32>
    %293 = vector.extract_strided_slice %290 {offsets = [0, 0], sizes = [2, 64], strides = [1, 1]} : vector<2x192xf32> to vector<2x64xf32>
    %294 = vector.extract_strided_slice %290 {offsets = [0, 64], sizes = [2, 64], strides = [1, 1]} : vector<2x192xf32> to vector<2x64xf32>
    %295 = vector.extract_strided_slice %290 {offsets = [0, 128], sizes = [2, 64], strides = [1, 1]} : vector<2x192xf32> to vector<2x64xf32>
    %296 = arith.mulf %294, %272 : vector<2x64xf32>
    %297 = arith.mulf %293, %292 : vector<2x64xf32>
    %298 = arith.addf %296, %297 : vector<2x64xf32>
    %299 = math.tanh %298 : vector<2x64xf32>
    %300 = arith.mulf %295, %299 : vector<2x64xf32>
    %cst_79 = arith.constant 0.000000e+00 : f32
    %301 = vector.broadcast %cst_79 : f32 to vector<2x64xf32>
    %302 = arith.select %279, %300, %301 : vector<2x64xi1>, vector<2x64xf32>
    %303 = vector.extract_strided_slice %302 {offsets = [0, 0], sizes = [2, 32], strides = [1, 1]} : vector<2x64xf32> to vector<2x32xf32>
    %c14_80 = arith.constant 14 : index
    %c0_81 = arith.constant 0 : index
    %304 = vector.load %arg8[%c14_80, %c0_81] : memref<16x32xf32, #tpu.memory_space<vmem>>, vector<2x32xf32>
    tpu.vector_store %arg8[%c14_80, %c0_81], %303 {strides = array<i32>} : memref<16x32xf32, #tpu.memory_space<vmem>>, vector<2x32xf32>,
    %305 = vector.extract_strided_slice %302 {offsets = [0, 32], sizes = [2, 32], strides = [1, 1]} : vector<2x64xf32> to vector<2x32xf32>
    %c0_82 = arith.constant 0 : index
    %c0_83 = arith.constant 0 : index
    %306 = vector.load %arg9[%c0_82, %c0_83] : memref<16x32xf32, #tpu.memory_space<vmem>>, vector<2x32xf32>
    tpu.vector_store %arg9[%c0_82, %c0_83], %305 {strides = array<i32>} : memref<16x32xf32, #tpu.memory_space<vmem>>, vector<2x32xf32>,
    %307 = arith.select %279, %300, %271 : vector<2x64xi1>, vector<2x64xf32>
    %308 = arith.select %279, %298, %272 : vector<2x64xi1>, vector<2x64xf32>
    %c0_84 = arith.constant 0 : index
    %c0_85 = arith.constant 0 : index
    %309 = vector.load %arg10[%c0_84, %c0_85] : memref<2x64xf32, #tpu.memory_space<vmem>>, vector<2x64xf32>
    tpu.vector_store %arg10[%c0_84, %c0_85], %307 {strides = array<i32>} : memref<2x64xf32, #tpu.memory_space<vmem>>, vector<2x64xf32>,
    %c0_86 = arith.constant 0 : index
    %c0_87 = arith.constant 0 : index
    %310 = vector.load %arg11[%c0_86, %c0_87] : memref<2x64xf32, #tpu.memory_space<vmem>>, vector<2x64xf32>
    tpu.vector_store %arg11[%c0_86, %c0_87], %308 {strides = array<i32>} : memref<2x64xf32, #tpu.memory_space<vmem>>, vector<2x64xf32>,
    return
  }
  func.func @transform_0(%arg0: i32) -> (i32, i32) {
    %c0_i32 = arith.constant 0 : i32
    %c0_i32_0 = arith.constant 0 : i32
    %c0_i32_1 = arith.constant 0 : i32
    return %c0_i32, %c0_i32_0 : i32, i32
  }
  func.func @transform_1(%arg0: i32) -> (i32, i32) {
    %c0_i32 = arith.constant 0 : i32
    %c0_i32_0 = arith.constant 0 : i32
    return %arg0, %c0_i32 : i32, i32
  }
  func.func @transform_2(%arg0: i32) -> (i32, i32) {
    %c0_i32 = arith.constant 0 : i32
    %0 = arith.subi %c0_i32, %arg0 : i32
    %c0_i32_0 = arith.constant 0 : i32
    %c0_i32_1 = arith.constant 0 : i32
    return %0, %c0_i32_0 : i32, i32
  }
  func.func @transform_3(%arg0: i32) -> (i32, i32) {
    %c0_i32 = arith.constant 0 : i32
    %c0_i32_0 = arith.constant 0 : i32
    %c0_i32_1 = arith.constant 0 : i32
    return %c0_i32, %c0_i32_0 : i32, i32
  }
  func.func @transform_4(%arg0: i32) -> (i32, i32) {
    %c0_i32 = arith.constant 0 : i32
    %c0_i32_0 = arith.constant 0 : i32
    %c0_i32_1 = arith.constant 0 : i32
    return %c0_i32, %c0_i32_0 : i32, i32
  }
  func.func @transform_5(%arg0: i32) -> (i32, i32) {
    %c0_i32 = arith.constant 0 : i32
    %c0_i32_0 = arith.constant 0 : i32
    %c0_i32_1 = arith.constant 0 : i32
    return %c0_i32, %c0_i32_0 : i32, i32
  }
  func.func @transform_6(%arg0: i32) -> (i32, i32) {
    %c0_i32 = arith.constant 0 : i32
    %c0_i32_0 = arith.constant 0 : i32
    %c0_i32_1 = arith.constant 0 : i32
    return %c0_i32, %c0_i32_0 : i32, i32
  }
  func.func @transform_7(%arg0: i32) -> (i32, i32) {
    %c0_i32 = arith.constant 0 : i32
    %c0_i32_0 = arith.constant 0 : i32
    return %arg0, %c0_i32 : i32, i32
  }
  func.func @transform_8(%arg0: i32) -> (i32, i32) {
    %c0_i32 = arith.constant 0 : i32
    %0 = arith.subi %c0_i32, %arg0 : i32
    %c0_i32_0 = arith.constant 0 : i32
    %c0_i32_1 = arith.constant 0 : i32
    return %0, %c0_i32_0 : i32, i32
  }
}

</mosaic_0001>

<bundles_post_ra>
// kernel: second_lstm_forward.2
= control target key start
LH: loop header
LB: loop body
LE: loop exit
PB: predicated region body
PF: predicated region fallthrough
CT: control target
= control target key end

     0   :  { %vm68_vm0 = vcmask 517120   ;;  %v1774_v3 = vmov 0.0   ;;  %vm101_vm1 = vcmask 523264   ;;  %vm436_vm4 = vcmask 254976   ;;  %s2314_s3 = inlined_call_operand.vmem [shape: f32[64,256], index: 3, kind: input, shape index: {}]   ;;  %s2315_s4 = inlined_call_operand.vmem [shape: f32[64,256], index: 4, kind: input, shape index: {}]   ;;  %s2316_s5 = inlined_call_operand.vmem [shape: f32[64,256], index: 5, kind: input, shape index: {}]   ;;  %s2317_s1 = inlined_call_operand.vmem [shape: f32[16,64], index: 1, kind: input, shape index: {}, may-alias: {1,2}]   ;;  %s2318_s2 = inlined_call_operand.vmem [shape: f32[16,64], index: 2, kind: input, shape index: {}, may-alias: {1,2}]   ;;  %s2319_s6 = inlined_call_operand.vmem [shape: f32[1,256], index: 6, kind: input, shape index: {}]   ;;  %s2320_s0 = inlined_call_operand.vmem [shape: s32[2,1], index: 0, kind: input, shape index: {}]   ;;  %s2321_s7 = inlined_call_operand.vmem [shape: f32[16,32], index: 7, kind: output, shape index: {0}]   ;;  %s2322_s8 = inlined_call_operand.vmem [shape: f32[16,32], index: 8, kind: output, shape index: {1}]  }
   0x1   :  { %v74_v0 = vld [vmem:[%s2314_s3 + $0x8] sm:$0xff]  ;;  %v76_v1 = vld [vmem:[%s2314_s3 + $0x18] sm:$0xff]  ;;  %172 = vmatprep.mubr.f32.mxu0 %v1774_v3  ;;  %273 = vmatprep.mubr.f32.mxu1 %v1774_v3  ;;  %69 = vst.msk [vmem:[#allocation2] sm:$0x3] %vm68_vm0, %v1774_v3  ;;  %70 = vst.msk [vmem:[#allocation3] sm:$0x3] %vm68_vm0, %v1774_v3 }
   0x2   :  { %v188_v2 = vld [vmem:[%s2315_s4 + $0x8] sm:$0xff]  ;;  %v1505_v4 = vpack.c.bf16 %v76_v1, %v74_v0  ;;  %v190_v5 = vld [vmem:[%s2315_s4 + $0x18] sm:$0xff]  ;;  %v73_v6 = vld [vmem:[%s2314_s3] sm:$0xff] }
   0x3   :  { %v75_v7 = vld [vmem:[%s2314_s3 + $0x10] sm:$0xff]  ;;  %v1521_v8 = vpack.c.bf16 %v190_v5, %v188_v2  ;;  %v187_v10 = vld [vmem:[%s2315_s4] sm:$0xff]  ;;  %v78_v12 = vld [vmem:[%s2314_s3 + $0x28] sm:$0xff] }
   0x4   :  { %v1507_v9 = vpack.c.bf16 %v75_v7, %v73_v6  ;;  %v189_v11 = vld [vmem:[%s2315_s4 + $0x10] sm:$0xff]  ;;  %1506 = vmatprep.subr.bf16.mxu0 %v1505_v4  ;;  %v80_v14 = vld [vmem:[%s2314_s3 + $0x38] sm:$0xff]  ;;  %v192_v15 = vld [vmem:[%s2315_s4 + $0x28] sm:$0xff] }
   0x5   :  { %v1523_v13 = vpack.c.bf16 %v189_v11, %v187_v10  ;;  %v194_v16 = vld [vmem:[%s2315_s4 + $0x38] sm:$0xff]  ;;  %1522 = vmatprep.subr.bf16.mxu1 %v1521_v8  ;;  %v1509_v17 = vpack.c.bf16 %v80_v14, %v78_v12  ;;  %v77_v19 = vld [vmem:[%s2314_s3 + $0x20] sm:$0xff]  ;;  %v79_v20 = vld [vmem:[%s2314_s3 + $0x30] sm:$0xff] }
   0x6   :  { %1508 = vmatpush1.bf16.msra.mxu0 %v1507_v9  ;;  %v1525_v18 = vpack.c.bf16 %v194_v16, %v192_v15  ;;  %v191_v21 = vld [vmem:[%s2315_s4 + $0x20] sm:$0xff]  ;;  %v1511_v22 = vpack.c.bf16 %v79_v20, %v77_v19  ;;  %v193_v23 = vld [vmem:[%s2315_s4 + $0x30] sm:$0xff]  ;;  %v82_v24 = vld [vmem:[%s2314_s3 + $0x48] sm:$0xff]  ;;  %v91_v15 = vlaneseq }
   0x7   :  { %1524 = vmatpush1.bf16.msra.mxu1 %v1523_v13  ;;  %v84_v25 = vld [vmem:[%s2314_s3 + $0x58] sm:$0xff]  ;;  %1510 = vmatprep.subr.bf16.mxu0 %v1509_v17  ;;  %v1527_v26 = vpack.c.bf16 %v193_v23, %v191_v21  ;;  %v196_v28 = vld [vmem:[%s2315_s4 + $0x48] sm:$0xff]  ;;  %v81_v30 = vld [vmem:[%s2314_s3 + $0x40] sm:$0xff] }
   0x8   :  { %1526 = vmatprep.subr.bf16.mxu1 %v1525_v18  ;;  %v1513_v27 = vpack.c.bf16 %v84_v25, %v82_v24  ;;  %v198_v29 = vld [vmem:[%s2315_s4 + $0x58] sm:$0xff]  ;;  %v83_v32 = vld [vmem:[%s2314_s3 + $0x50] sm:$0xff]  ;;  %v195_v33 = vld [vmem:[%s2315_s4 + $0x40] sm:$0xff]  ;;  %v92_v16 = vshrl.u32 %v91_v15, 7 }
   0x9   :  { %v1529_v31 = vpack.c.bf16 %v198_v29, %v196_v28  ;;  %v197_v34 = vld [vmem:[%s2315_s4 + $0x50] sm:$0xff]  ;;  %v1515_v35 = vpack.c.bf16 %v83_v32, %v81_v30  ;;  %v86_v36 = vld [vmem:[%s2314_s3 + $0x68] sm:$0xff]  ;;  %v88_v37 = vld [vmem:[%s2314_s3 + $0x78] sm:$0xff] }
   0xa   :  { %1512 = vmatpush1.bf16.msra.mxu0 %v1511_v22  ;;  %v200_v38 = vld [vmem:[%s2315_s4 + $0x68] sm:$0xff]  ;;  %v1531_v39 = vpack.c.bf16 %v197_v34, %v195_v33  ;;  %v1517_v40 = vpack.c.bf16 %v88_v37, %v86_v36  ;;  %v202_v41 = vld [vmem:[%s2315_s4 + $0x78] sm:$0xff]  ;;  %v85_v42 = vld [vmem:[%s2314_s3 + $0x60] sm:$0xff]  ;;  %v93_v17 = vsub.s32 0, %v92_v16  ;;  %v97_v19 = vsub.s32 1, %v92_v16 }
   0xb   :  { %1528 = vmatpush1.bf16.msra.mxu1 %v1527_v26  ;;  %1514 = vmatprep.subr.bf16.mxu0 %v1513_v27  ;;  %v87_v43 = vld [vmem:[%s2314_s3 + $0x70] sm:$0xff]  ;;  %v1533_v44 = vpack.c.bf16 %v202_v41, %v200_v38  ;;  %v199_v45 = vld [vmem:[%s2315_s4 + $0x60] sm:$0xff]  ;;  %v287_v47 = vld [vmem:[%s2316_s5 + $0x8] sm:$0xff] }
   0xc   :  { %1530 = vmatprep.subr.bf16.mxu1 %v1529_v31  ;;  %v201_v46 = vld [vmem:[%s2315_s4 + $0x70] sm:$0xff]  ;;  %v289_v48 = vld [vmem:[%s2316_s5 + $0x18] sm:$0xff]  ;;  %v1519_v49 = vpack.c.bf16 %v87_v43, %v85_v42  ;;  %v286_v52 = vld [vmem:[%s2316_s5] sm:$0xff]  ;;  %s1784_s4 = smov 96  }
   0xd   :  { %v1535_v50 = vpack.c.bf16 %v201_v46, %v199_v45  ;;  %v1938_v51 = vpack.c.bf16 %v289_v48, %v287_v47  ;;  %v288_v53 = vld [vmem:[%s2316_s5 + $0x10] sm:$0xff]  ;;  %v291_v54 = vld [vmem:[%s2316_s5 + $0x28] sm:$0xff]  ;;  %v293_v55 = vld [vmem:[%s2316_s5 + $0x38] sm:$0xff] }
   0xe   :  { %1516 = vmatpush1.bf16.msra.mxu0 %v1515_v35  ;;  %v71_v56 = vld [vmem:[%s2317_s1] sm:$0xff]  ;;  %v1955_v57 = vpack.c.bf16 %v288_v53, %v286_v52  ;;  %v1961_v59 = vpack.c.bf16 %v293_v55, %v291_v54  ;;  %v292_v61 = vld [vmem:[%s2316_s5 + $0x30] sm:$0xff]  ;;  %v295_v62 = vld [vmem:[%s2316_s5 + $0x48] sm:$0xff]  ;;  %v1775_v54 = vmov 0  }
   0xf   :  { %1532 = vmatpush1.bf16.msra.mxu1 %v1531_v39  ;;  %1518 = vmatprep.subr.bf16.mxu0 %v1517_v40  ;;  %v185_v58 = vld [vmem:[%s2318_s2] sm:$0xff]  ;;  %v297_v63 = vld [vmem:[%s2316_s5 + $0x58] sm:$0xff]  ;;  %v72_v1 = vld [vmem:[%s2317_s1 + $0x8] sm:$0xff] }
  0x10   :  { %1534 = vmatprep.subr.bf16.mxu1 %v1533_v44  ;;  %v290_v60 = vld [vmem:[%s2316_s5 + $0x20] sm:$0xff]  ;;  %v186_v2 = vld [vmem:[%s2318_s2 + $0x8] sm:$0xff]  ;;  %v1989_v4 = vpack.c.bf16 %v297_v63, %v295_v62  ;;  %v296_v6 = vld [vmem:[%s2316_s5 + $0x50] sm:$0xff]  ;;  %1676 = vset.pattern.permute.xlu1 %v1775_v54 }
  0x11   :  { %v1979_v0 = vpack.c.bf16 %v292_v61, %v290_v60  ;;  %v294_v5 = vld [vmem:[%s2316_s5 + $0x40] sm:$0xff]  ;;  %v299_v7 = vld [vmem:[%s2316_s5 + $0x68] sm:$0xff]  ;;  %v301_v8 = vld [vmem:[%s2316_s5 + $0x78] sm:$0xff]  ;;  %1677 = vset.pattern.permute.xlu0 %v1775_v54 }
  0x12   :  { %1520 = vmatpush1.bf16.msra.mxu0 %v1519_v49  ;;  %v2009_v9 = vpack.c.bf16 %v296_v6, %v294_v5  ;;  %v2012_v10 = vpack.c.bf16 %v301_v8, %v299_v7  ;;  %v298_v11 = vld [vmem:[%s2316_s5 + $0x60] sm:$0xff]  ;;  %v300_v12 = vld [vmem:[%s2316_s5 + $0x70] sm:$0xff] }
  0x13   :  { %1536 = vmatpush1.bf16.msra.mxu1 %v1535_v50  ;;  %1538 = vmatprep.subr.bf16.mxu0 %v1938_v51  ;;  %v2025_v13 = vpack.c.bf16 %v300_v12, %v298_v11  ;;  %v2031_v14 = vld [vmem:[#allocation2] sm:$0x3] }
  0x14   :  { %1554 = vmatprep.subr.bf16.mxu1 %v1938_v51  ;;  %v89_v18 = vld [vmem:[%s2319_s6] sm:$0x3]  ;;  %s1776_s6 = smov 64  }
  0x15   :  { %1477 = vmatmul.mubr.msk.f32.vlgmr.msra.gmra.mrb[0].mxu0 %vm101_vm1, %v71_v56  ;;  %v94_v21 = vrot.slane %v89_v18, %v93_v17  ;;  %v98_v24 = vrot.slane %v89_v18, %v97_v19  ;;  %v310_v56 = vld [vmem:[#allocation3] sm:$0x3]  ;;  %v302_v5 = vld [vmem:[%s2320_s0] sm:$0x3]  ;;  %v2080_v17 = vand.u32 127, %v91_v15 }
  0x16   :  { %1479 = vmatmul.mubr.msk.f32.vlgmr.msra.gmra.mrb[0].mxu1 %vm101_vm1, %v185_v58  ;;  %1540 = vmatpush1.bf16.msra.mxu0 %v1955_v57 }
  0x17   :  { %279 = vmatprep.mubr.f32.mxu1 %v1774_v3  ;;  %1542 = vmatprep.subr.bf16.mxu0 %v1961_v59  ;;  %vm308_vm2 = vcmp.lt.s32.totalorder %v2080_v17, 32 }
  0x18   :  { %178 = vmatprep.mubr.f32.mxu0 %v1774_v3  ;;  %1556 = vmatpush1.bf16.msra.mxu1 %v1955_v57 }
  0x19   :  { %1478 = vmatmul.mubr.msk.f32.gmra.mrb[2].mxu0 %vm101_vm1, %v72_v1  ;;  %1558 = vmatprep.subr.bf16.mxu1 %v1961_v59 }
  0x1a   :  { %1480 = vmatmul.mubr.msk.f32.gmra.mrb[2].mxu1 %vm101_vm1, %v186_v2  ;;  %1544 = vmatpush1.bf16.msra.mxu0 %v1979_v0 }
  0x1b   :  { %1546 = vmatprep.subr.bf16.mxu0 %v1989_v4  ;;  %384 = vmatprep.mubr.f32.mxu0 %v1774_v3 }
  0x1c   :  { %1560 = vmatpush1.bf16.msra.mxu1 %v1979_v0  ;;  %522 = vmatprep.mubr.f32.mxu1 %v1774_v3 }
  0x1d   :  { %1562 = vmatprep.subr.bf16.mxu1 %v1989_v4 }
  0x1e   :  { %1548 = vmatpush1.bf16.msra.mxu0 %v2009_v9 }
  0x1f   :  { %1550 = vmatprep.subr.bf16.mxu0 %v2012_v10 }
  0x20   :  { %1564 = vmatpush1.bf16.msra.mxu1 %v2009_v9 }
  0x21   :  { %1566 = vmatprep.subr.bf16.mxu1 %v2012_v10 }
  0x22   :  { %1552 = vmatpush1.bf16.msra.mxu0 %v2025_v13 }
  0x23   :  { %1570 = vmatprep.subr.bf16.mxu0 %v1938_v51 }
  0x24   :  { %1568 = vmatpush1.bf16.msra.mxu1 %v2025_v13 }
  0x25   :  { %1481 = vmatmul.mubr.msk.f32.vlgmr.msra.gmra.mrb[4].mxu0 %vm101_vm1, %v2031_v14  ;;  %1586 = vmatprep.subr.bf16.mxu1 %v1938_v51 }
  0x26   :  { %1572 = vmatpush1.bf16.msra.mxu0 %v1955_v57  ;;  %668 = vmatprep.mubr.f32.mxu0 %v1774_v3 }
  0x27   :  { %1574 = vmatprep.subr.bf16.mxu0 %v1961_v59 }
  0x2a   :  { %1576 = vmatpush1.bf16.msra.mxu0 %v1979_v0 }
  0x2b   :  { %1578 = vmatprep.subr.bf16.mxu0 %v1989_v4 }
  0x2e   :  { %1580 = vmatpush1.bf16.msra.mxu0 %v2009_v9 }
  0x2f   :  { %1582 = vmatprep.subr.bf16.mxu0 %v2012_v10 }
  0x32   :  { %1584 = vmatpush1.bf16.msra.mxu0 %v2025_v13 }
  0x33   :  { %1602 = vmatprep.subr.bf16.mxu0 %v1938_v51 }
  0xe8   :  { %v174_v20 = vpop.f32.mrb[0].mxu0 }
  0xe9   :  { %v176_v22 = vpop.f32.mrb[1].mxu0  ;;  %v275_v23 = vpop.f32.mrb[0].mxu1  ;;  %v175_v31 = vadd.f32 %v174_v20, %v94_v21  ;;  %v1777_v20 = vmov 7  }
  0xea   :  { %v277_v25 = vpop.f32.mrb[1].mxu1  ;;  %v957_v26 = vrot.slane %v275_v23, 6  ;;  %v1092_v27 = vrot.slane %v275_v23, 2  ;;  %v177_v35 = vadd.f32 %v176_v22, %v98_v24 }
  0xeb   :  { %v958_v28 = vrot.slane %v277_v25, 6  ;;  %v1093_v29 = vrot.slane %v277_v25, 2 }
  0xec   :  { %v180_v30 = vpop.f32.mrb[2].mxu0 }
  0xed   :  { %v281_v32 = vpop.f32.mrb[2].mxu1  ;;  %v181_v33 = vadd.f32 %v180_v30, %v94_v21  ;;  %v182_v34 = vpop.f32.mrb[3].mxu0  ;;  %v315_v21 = vsel %vm308_vm2, 0, %v1777_v20 }
  0xee   :  { %v393_v36 = vrot.slane %v281_v32, 6  ;;  %v529_v37 = vrot.slane %v281_v32, 2  ;;  %v283_v38 = vpop.f32.mrb[3].mxu1  ;;  %v183_v39 = vadd.f32 %v182_v34, %v98_v24 }
  0xef   :  { %v394_v40 = vrot.slane %v283_v38, 6  ;;  %v530_v41 = vrot.slane %v283_v38, 2  ;;  %v2051_v42 = vadd.f32 %v1092_v27, %v181_v33  ;;  %v2053_v43 = vadd.f32 %v957_v26, %v181_v33 }
  0xf0   :  { %v2055_v44 = vadd.f32 %v529_v37, %v175_v31  ;;  %v2057_v45 = vadd.f32 %v1093_v29, %v183_v39  ;;  %v2059_v46 = vadd.f32 %v393_v36, %v175_v31  ;;  %v2061_v47 = vadd.f32 %v958_v28, %v183_v39 }
  0xf1   :  { %v2063_v48 = vadd.f32 %v530_v41, %v177_v35  ;;  %v2065_v49 = vadd.f32 %v394_v40, %v177_v35 }
  0xf8   :  { %v386_v50 = vpop.f32.mrb[4].mxu0 }
  0xf9   :  { %v388_v52 = vpop.f32.mrb[5].mxu0  ;;  %v399_v58 = vadd.f32 %v2059_v46, %v386_v50 }
  0xfa   :  { %v400_v53 = vadd.f32 %v2065_v49, %v388_v52 }
  0xfb   :  { %v1482_v60 = vmul.f32 -1.442695, %v399_v58 }
  0xfc   :  { %1678 = vtanh.f32 %v400_v53  ;;  %v1483_v16 = vmul.f32 -1.442695, %v400_v53 }
  0xfd   :  { %1680 = vpow2.f32 %v1482_v60 }
 0x106   :  { %v1679_v55 = vpop.eup %1678 }
 0x107   :  { %420 = vrot.lane.b32.xlu0 %v1679_v55, %s1776_s6  ;;  %v1681_v61 = vpop.eup %1680 }
 0x108   :  { %v407_v62 = vadd.f32 1.0, %v1681_v61 }
 0x10a   :  { %1682 = vrcp.f32 %v407_v62 }
 0x10b   :  { %415 = vrot.lane.b32.xlu0 %v310_v56, %s1776_s6 }
 0x114   :  { %v1683_v63 = vpop.eup %1682 }
 0x179   :  { %v421_v1 = vpop.permute.xlu0 %420 }
 0x17a   :  { %v423_v2 = vmul.f32 %v1683_v63, %v421_v1 }
 0x17c   :  { %425 = vrot.lane.b32.xlu1 %v423_v2, %s1776_s6 }
 0x17d   :  { %v416_v6 = vpop.permute.xlu0 %415 }
 0x17e   :  { %v418_v7 = vmul.f32 %v1683_v63, %v416_v6  ;;  %v1778_v63 = vmov 6  }
 0x17f   :  { %v453_v1 = vsel %vm308_vm2, 1, %v1778_v63 }
 0x180   :  { %304 = vperm.xlu1 %1676, %v302_v5  }
 0x1ee   :  { %v426_v8 = vpop.permute.xlu1 %425 }
 0x1ef   :  { %v428_v11 = vadd.f32 %v426_v8, %v418_v7 }
 0x1f1   :  { %1684 = vtanh.f32 %v428_v11  ;;  %445 = vrot.lane.b32.xlu1 %v428_v11, %s1776_s6 }
 0x1f2   :  { %1686 = vpow2.f32 %v1483_v16 }
 0x1fb   :  { %v1685_v12 = vpop.eup %1684 }
 0x1fc   :  { %431 = vrot.lane.b32.xlu0 %v1685_v12, %s1776_s6  ;;  %v1687_v18 = vpop.eup %1686 }
 0x1fd   :  { %v408_v22 = vadd.f32 1.0, %v1687_v18 }
 0x1ff   :  { %v2083_v19 = vpop.permute.xlu1 %304  ;;  %1688 = vrcp.f32 %v408_v22 }
 0x200   :  { %vm316_vm3 = vcmp.lt.s32.totalorder %v315_v21, %v2083_v19  ;;  %vm454_vm5 = vcmp.lt.s32.totalorder %v453_v1, %v2083_v19 }
 0x209   :  { %v1689_v15 = vpop.eup %1688 }
 0x263   :  { %v446_v23 = vpop.permute.xlu1 %445 }
 0x264   :  { %v448_v24 = vsel %vm316_vm3, %v446_v23, %v310_v56 }
 0x265   :  { %v557_v25 = vrot.slane %v448_v24, 6 }
 0x267   :  { %558 = vrot.lane.b32.xlu1 %v557_v25, %s1776_s6 }
 0x26e   :  { %v432_v26 = vpop.permute.xlu0 %431 }
 0x26f   :  { %v434_v27 = vmul.f32 %v1689_v15, %v432_v26 }
 0x271   :  { %v443_v28 = vsel %vm316_vm3, %v434_v27, %v2031_v14  ;;  %v2090_v29 = vsel %vm316_vm3, %v434_v27, 0.0 }
 0x272   :  { %1484 = vmatmul.mubr.msk.f32.vlgmr.msra.gmra.mrb[4].mxu1 %vm101_vm1, %v443_v28  ;;  %437 = vst.msk [vmem:[%s2321_s7] sm:$0x3] %vm436_vm4, %v2090_v29 }
 0x273   :  { %1588 = vmatpush1.bf16.msra.mxu1 %v1955_v57  ;;  %808 = vmatprep.mubr.f32.mxu1 %v1774_v3 }
 0x274   :  { %1590 = vmatprep.subr.bf16.mxu1 %v1961_v59 }
 0x277   :  { %1592 = vmatpush1.bf16.msra.mxu1 %v1979_v0 }
 0x278   :  { %1594 = vmatprep.subr.bf16.mxu1 %v1989_v4 }
 0x27b   :  { %1596 = vmatpush1.bf16.msra.mxu1 %v2009_v9 }
 0x27c   :  { %1598 = vmatprep.subr.bf16.mxu1 %v2012_v10 }
 0x27f   :  { %1600 = vmatpush1.bf16.msra.mxu1 %v2025_v13 }
 0x280   :  { %1618 = vmatprep.subr.bf16.mxu1 %v1938_v51 }
 0x2d9   :  { %v559_v50 = vpop.permute.xlu1 %558 }
 0x345   :  { %v524_v14 = vpop.f32.mrb[4].mxu1 }
 0x346   :  { %v526_v30 = vpop.f32.mrb[5].mxu1  ;;  %v537_v34 = vrot.slane %v524_v14, 6 }
 0x347   :  { %v538_v31 = vrot.slane %v526_v30, 6 }
 0x348   :  { %v541_v35 = vadd.f32 %v537_v34, %v2055_v44 }
 0x349   :  { %v542_v32 = vadd.f32 %v538_v31, %v2063_v48 }
 0x34a   :  { %v1485_v36 = vmul.f32 -1.442695, %v541_v35 }
 0x34b   :  { %1690 = vtanh.f32 %v542_v32  ;;  %v1486_v60 = vmul.f32 -1.442695, %v542_v32 }
 0x34c   :  { %1692 = vpow2.f32 %v1485_v36 }
 0x355   :  { %v1691_v33 = vpop.eup %1690 }
 0x356   :  { %563 = vrot.lane.b32.xlu0 %v1691_v33, %s1776_s6  ;;  %v1693_v37 = vpop.eup %1692 }
 0x357   :  { %v549_v38 = vadd.f32 1.0, %v1693_v37 }
 0x359   :  { %1694 = vrcp.f32 %v549_v38 }
 0x363   :  { %v1695_v39 = vpop.eup %1694 }
 0x364   :  { %v561_v52 = vmul.f32 %v1695_v39, %v559_v50 }
 0x3c8   :  { %v564_v40 = vpop.permute.xlu0 %563 }
 0x3c9   :  { %v566_v41 = vmul.f32 %v1695_v39, %v564_v40  ;;  %v1779_v39 = vmov 5  }
 0x3ca   :  { %v599_v40 = vsel %vm308_vm2, 2, %v1779_v39 }
 0x3cb   :  { %568 = vrot.lane.b32.xlu0 %v566_v41, %s1776_s6  ;;  %vm600_vm6 = vcmp.lt.s32.totalorder %v599_v40, %v2083_v19 }
 0x43d   :  { %v569_v53 = vpop.permute.xlu0 %568 }
 0x43e   :  { %v571_v55 = vadd.f32 %v569_v53, %v561_v52 }
 0x440   :  { %1696 = vtanh.f32 %v571_v55  ;;  %v590_v56 = vrot.slane %v571_v55, 2 }
 0x441   :  { %1698 = vpow2.f32 %v1486_v60 }
 0x442   :  { %591 = vrot.lane.b32.xlu0 %v590_v56, %s1776_s6 }
 0x44a   :  { %v1697_v58 = vpop.eup %1696 }
 0x44b   :  { %574 = vrot.lane.b32.xlu1 %v1697_v58, %s1776_s6  ;;  %v1699_v61 = vpop.eup %1698 }
 0x44c   :  { %v550_v62 = vadd.f32 1.0, %v1699_v61 }
 0x44e   :  { %1700 = vrcp.f32 %v550_v62 }
 0x458   :  { %v1701_v7 = vpop.eup %1700 }
 0x4b4   :  { %v592_v2 = vpop.permute.xlu0 %591 }
 0x4b5   :  { %v594_v5 = vsel %vm454_vm5, %v592_v2, %v448_v24 }
 0x4b6   :  { %v697_v6 = vrot.slane %v594_v5, 4 }
 0x4b8   :  { %698 = vrot.lane.b32.xlu0 %v697_v6, %s1776_s6 }
 0x4bd   :  { %v575_v8 = vpop.permute.xlu1 %574 }
 0x4be   :  { %v577_v11 = vmul.f32 %v1701_v7, %v575_v8 }
 0x4c0   :  { %v579_v12 = vrot.slane %v577_v11, 2 }
 0x4c2   :  { %v588_v16 = vsel %vm454_vm5, %v579_v12, %v443_v28  ;;  %v2117_v18 = vsel %vm454_vm5, %v579_v12, 0.0 }
 0x4c3   :  { %1487 = vmatmul.mubr.msk.f32.vlgmr.msra.gmra.mrb[6].mxu0 %vm101_vm1, %v588_v16  ;;  %582 = vst.msk [vmem:[%s2321_s7 + $0x2] sm:$0x3] %vm436_vm4, %v2117_v18 }
 0x4c4   :  { %1604 = vmatpush1.bf16.msra.mxu0 %v1955_v57  ;;  %948 = vmatprep.mubr.f32.mxu0 %v1774_v3 }
 0x4c5   :  { %1606 = vmatprep.subr.bf16.mxu0 %v1961_v59 }
 0x4c8   :  { %1608 = vmatpush1.bf16.msra.mxu0 %v1979_v0 }
 0x4c9   :  { %1610 = vmatprep.subr.bf16.mxu0 %v1989_v4 }
 0x4cc   :  { %1612 = vmatpush1.bf16.msra.mxu0 %v2009_v9 }
 0x4cd   :  { %1614 = vmatprep.subr.bf16.mxu0 %v2012_v10 }
 0x4d0   :  { %1616 = vmatpush1.bf16.msra.mxu0 %v2025_v13 }
 0x4d1   :  { %1634 = vmatprep.subr.bf16.mxu0 %v1938_v51 }
 0x52a   :  { %v699_v32 = vpop.permute.xlu0 %698 }
 0x596   :  { %v670_v20 = vpop.f32.mrb[6].mxu0 }
 0x597   :  { %v672_v21 = vpop.f32.mrb[7].mxu0  ;;  %v677_v25 = vrot.slane %v670_v20, 4 }
 0x598   :  { %v678_v22 = vrot.slane %v672_v21, 4 }
 0x599   :  { %v681_v15 = vadd.f32 %v677_v25, %v2059_v46 }
 0x59a   :  { %v682_v23 = vadd.f32 %v678_v22, %v2065_v49 }
 0x59b   :  { %v1488_v26 = vmul.f32 -1.442695, %v681_v15 }
 0x59c   :  { %1702 = vtanh.f32 %v682_v23  ;;  %v1489_v46 = vmul.f32 -1.442695, %v682_v23 }
 0x59d   :  { %1704 = vpow2.f32 %v1488_v26 }
 0x5a6   :  { %v1703_v24 = vpop.eup %1702 }
 0x5a7   :  { %703 = vrot.lane.b32.xlu1 %v1703_v24, %s1776_s6  ;;  %v1705_v27 = vpop.eup %1704 }
 0x5a8   :  { %v689_v28 = vadd.f32 1.0, %v1705_v27  ;;  %v1780_v27 = vmov 4  }
 0x5aa   :  { %1706 = vrcp.f32 %v689_v28  ;;  %v739_v28 = vsel %vm308_vm2, 3, %v1780_v27 }
 0x5ab   :  { %vm740_vm7 = vcmp.lt.s32.totalorder %v739_v28, %v2083_v19 }
 0x5b4   :  { %v1707_v14 = vpop.eup %1706 }
 0x5b5   :  { %v701_v33 = vmul.f32 %v1707_v14, %v699_v32 }
 0x619   :  { %v704_v30 = vpop.permute.xlu1 %703 }
 0x61a   :  { %v706_v31 = vmul.f32 %v1707_v14, %v704_v30 }
 0x61c   :  { %708 = vrot.lane.b32.xlu1 %v706_v31, %s1776_s6 }
 0x68e   :  { %v709_v49 = vpop.permute.xlu1 %708 }
 0x68f   :  { %v711_v34 = vadd.f32 %v709_v49, %v701_v33 }
 0x691   :  { %1708 = vtanh.f32 %v711_v34  ;;  %v730_v35 = vrot.slane %v711_v34, 4 }
 0x692   :  { %1710 = vpow2.f32 %v1489_v46 }
 0x693   :  { %731 = vrot.lane.b32.xlu1 %v730_v35, %s1776_s6 }
 0x69b   :  { %v1709_v36 = vpop.eup %1708 }
 0x69c   :  { %714 = vrot.lane.b32.xlu0 %v1709_v36, %s1776_s6  ;;  %v1711_v37 = vpop.eup %1710 }
 0x69d   :  { %v690_v38 = vadd.f32 1.0, %v1711_v37 }
 0x69f   :  { %1712 = vrcp.f32 %v690_v38 }
 0x6a9   :  { %v1713_v53 = vpop.eup %1712 }
 0x705   :  { %v732_v41 = vpop.permute.xlu1 %731 }
 0x706   :  { %v734_v50 = vsel %vm600_vm6, %v732_v41, %v594_v5 }
 0x707   :  { %v837_v52 = vrot.slane %v734_v50, 2 }
 0x709   :  { %838 = vrot.lane.b32.xlu1 %v837_v52, %s1776_s6 }
 0x70e   :  { %v715_v55 = vpop.permute.xlu0 %714 }
 0x70f   :  { %v717_v56 = vmul.f32 %v1713_v53, %v715_v55 }
 0x711   :  { %v719_v58 = vrot.slane %v717_v56, 4 }
 0x713   :  { %v728_v60 = vsel %vm600_vm6, %v719_v58, %v588_v16  ;;  %v2144_v61 = vsel %vm600_vm6, %v719_v58, 0.0 }
 0x714   :  { %1490 = vmatmul.mubr.msk.f32.vlgmr.msra.gmra.mrb[6].mxu1 %vm101_vm1, %v728_v60  ;;  %722 = vst.msk [vmem:[%s2321_s7 + $0x4] sm:$0x3] %vm436_vm4, %v2144_v61 }
 0x715   :  { %1620 = vmatpush1.bf16.msra.mxu1 %v1955_v57  ;;  %1085 = vmatprep.mubr.f32.mxu1 %v1774_v3 }
 0x716   :  { %1622 = vmatprep.subr.bf16.mxu1 %v1961_v59 }
 0x719   :  { %1624 = vmatpush1.bf16.msra.mxu1 %v1979_v0 }
 0x71a   :  { %1626 = vmatprep.subr.bf16.mxu1 %v1989_v4 }
 0x71d   :  { %1628 = vmatpush1.bf16.msra.mxu1 %v2009_v9 }
 0x71e   :  { %1630 = vmatprep.subr.bf16.mxu1 %v2012_v10 }
 0x721   :  { %1632 = vmatpush1.bf16.msra.mxu1 %v2025_v13 }
 0x722   :  { %1650 = vmatprep.subr.bf16.mxu1 %v1938_v51 }
 0x77b   :  { %v839_v21 = vpop.permute.xlu1 %838 }
 0x7e7   :  { %v810_v62 = vpop.f32.mrb[6].mxu1 }
 0x7e8   :  { %v812_v63 = vpop.f32.mrb[7].mxu1  ;;  %v817_v6 = vrot.slane %v810_v62, 2 }
 0x7e9   :  { %v818_v1 = vrot.slane %v812_v63, 2 }
 0x7ea   :  { %v821_v7 = vadd.f32 %v817_v6, %v2055_v44  ;;  %v1781_v6 = vmov 3  }
 0x7eb   :  { %v822_v2 = vadd.f32 %v818_v1, %v2063_v48 }
 0x7ec   :  { %v1491_v8 = vmul.f32 -1.442695, %v821_v7  ;;  %v879_v7 = vsel %vm308_vm2, 4, %v1781_v6 }
 0x7ed   :  { %1714 = vtanh.f32 %v822_v2  ;;  %v1492_v44 = vmul.f32 -1.442695, %v822_v2  ;;  %vm880_vm8 = vcmp.lt.s32.totalorder %v879_v7, %v2083_v19 }
 0x7ee   :  { %1716 = vpow2.f32 %v1491_v8 }
 0x7f7   :  { %v1715_v5 = vpop.eup %1714 }
 0x7f8   :  { %843 = vrot.lane.b32.xlu0 %v1715_v5, %s1776_s6  ;;  %v1717_v11 = vpop.eup %1716 }
 0x7f9   :  { %v829_v12 = vadd.f32 1.0, %v1717_v11 }
 0x7fb   :  { %1718 = vrcp.f32 %v829_v12 }
 0x805   :  { %v1719_v16 = vpop.eup %1718 }
 0x806   :  { %v841_v22 = vmul.f32 %v1719_v16, %v839_v21 }
 0x86a   :  { %v844_v20 = vpop.permute.xlu0 %843 }
 0x86b   :  { %v846_v51 = vmul.f32 %v1719_v16, %v844_v20 }
 0x86d   :  { %848 = vrot.lane.b32.xlu0 %v846_v51, %s1776_s6 }
 0x8df   :  { %v849_v48 = vpop.permute.xlu0 %848 }
 0x8e0   :  { %v851_v23 = vadd.f32 %v849_v48, %v841_v22 }
 0x8e2   :  { %1720 = vtanh.f32 %v851_v23  ;;  %v870_v24 = vrot.slane %v851_v23, 6 }
 0x8e3   :  { %1722 = vpow2.f32 %v1492_v44 }
 0x8e4   :  { %871 = vrot.lane.b32.xlu0 %v870_v24, %s1776_s6 }
 0x8ec   :  { %v1721_v25 = vpop.eup %1720 }
 0x8ed   :  { %854 = vrot.lane.b32.xlu1 %v1721_v25, %s1776_s6  ;;  %v1723_v15 = vpop.eup %1722 }
 0x8ee   :  { %v830_v26 = vadd.f32 1.0, %v1723_v15 }
 0x8f0   :  { %1724 = vrcp.f32 %v830_v26 }
 0x8fa   :  { %v1725_v31 = vpop.eup %1724 }
 0x956   :  { %v872_v14 = vpop.permute.xlu0 %871 }
 0x957   :  { %v874_v30 = vsel %vm740_vm7, %v872_v14, %v734_v50 }
 0x958   :  { %979 = vrot.lane.b32.xlu0 %v874_v30, %s1776_s6 }
 0x95f   :  { %v855_v32 = vpop.permute.xlu1 %854 }
 0x960   :  { %v857_v33 = vmul.f32 %v1725_v31, %v855_v32 }
 0x962   :  { %v859_v49 = vrot.slane %v857_v33, 6 }
 0x964   :  { %v868_v34 = vsel %vm740_vm7, %v859_v49, %v728_v60  ;;  %v2171_v35 = vsel %vm740_vm7, %v859_v49, 0.0  ;;  %v1782_v49 = vmov 2  }
 0x965   :  { %1493 = vmatmul.mubr.msk.f32.vlgmr.msra.gmra.mrb[8].mxu0 %vm101_vm1, %v868_v34  ;;  %862 = vst.msk [vmem:[%s2321_s7 + $0x6] sm:$0x3] %vm436_vm4, %v2171_v35 }
 0x966   :  { %1636 = vmatpush1.bf16.msra.mxu0 %v1955_v57  ;;  %1231 = vmatprep.mubr.f32.mxu0 %v1774_v3 }
 0x967   :  { %1638 = vmatprep.subr.bf16.mxu0 %v1961_v59 }
 0x96a   :  { %1640 = vmatpush1.bf16.msra.mxu0 %v1979_v0 }
 0x96b   :  { %1642 = vmatprep.subr.bf16.mxu0 %v1989_v4 }
 0x96e   :  { %1644 = vmatpush1.bf16.msra.mxu0 %v2009_v9 }
 0x96f   :  { %1646 = vmatprep.subr.bf16.mxu0 %v2012_v10 }
 0x972   :  { %1648 = vmatpush1.bf16.msra.mxu0 %v2025_v13 }
 0x9ca   :  { %v980_v56 = vpop.permute.xlu0 %979 }
 0xa38   :  { %v950_v36 = vpop.f32.mrb[8].mxu0 }
 0xa39   :  { %v952_v46 = vpop.f32.mrb[9].mxu0  ;;  %v963_v39 = vadd.f32 %v2053_v43, %v950_v36 }
 0xa3a   :  { %v964_v37 = vadd.f32 %v2061_v47, %v952_v46 }
 0xa3b   :  { %v1494_v40 = vmul.f32 -1.442695, %v963_v39 }
 0xa3c   :  { %1726 = vtanh.f32 %v964_v37  ;;  %v1495_v1 = vmul.f32 -1.442695, %v964_v37 }
 0xa3d   :  { %1728 = vpow2.f32 %v1494_v40 }
 0xa46   :  { %v1727_v38 = vpop.eup %1726 }
 0xa47   :  { %984 = vrot.lane.b32.xlu1 %v1727_v38, %s1776_s6  ;;  %v1729_v41 = vpop.eup %1728 }
 0xa48   :  { %v971_v50 = vadd.f32 1.0, %v1729_v41 }
 0xa4a   :  { %1730 = vrcp.f32 %v971_v50 }
 0xa54   :  { %v1731_v52 = vpop.eup %1730 }
 0xa55   :  { %v982_v58 = vmul.f32 %v1731_v52, %v980_v56 }
 0xab9   :  { %v985_v53 = vpop.permute.xlu1 %984 }
 0xaba   :  { %v987_v55 = vmul.f32 %v1731_v52, %v985_v53 }
 0xabc   :  { %989 = vrot.lane.b32.xlu1 %v987_v55, %s1776_s6 }
 0xb2e   :  { %v990_v60 = vpop.permute.xlu1 %989 }
 0xb2f   :  { %v992_v62 = vadd.f32 %v990_v60, %v982_v58 }
 0xb31   :  { %1732 = vtanh.f32 %v992_v62  ;;  %1008 = vrot.lane.b32.xlu1 %v992_v62, %s1776_s6 }
 0xb32   :  { %1734 = vpow2.f32 %v1495_v1 }
 0xb3b   :  { %v1733_v63 = vpop.eup %1732 }
 0xb3c   :  { %995 = vrot.lane.b32.xlu0 %v1733_v63, %s1776_s6  ;;  %v1735_v2 = vpop.eup %1734 }
 0xb3d   :  { %v972_v5 = vadd.f32 1.0, %v1735_v2 }
 0xb3f   :  { %1736 = vrcp.f32 %v972_v5 }
 0xb49   :  { %v1737_v16 = vpop.eup %1736 }
 0xba3   :  { %v1009_v8 = vpop.permute.xlu1 %1008 }
 0xba4   :  { %v1011_v11 = vsel %vm880_vm8, %v1009_v8, %v874_v30 }
 0xba5   :  { %v1120_v12 = vrot.slane %v1011_v11, 6 }
 0xba7   :  { %1121 = vrot.lane.b32.xlu1 %v1120_v12, %s1776_s6 }
 0xbae   :  { %v996_v20 = vpop.permute.xlu0 %995 }
 0xbaf   :  { %v998_v51 = vmul.f32 %v1737_v16, %v996_v20 }
 0xbb1   :  { %v1006_v21 = vsel %vm880_vm8, %v998_v51, %v868_v34  ;;  %v2197_v22 = vsel %vm880_vm8, %v998_v51, 0.0  ;;  %v1016_v34 = vsel %vm308_vm2, 5, %v1782_v49 }
 0xbb2   :  { %1496 = vmatmul.mubr.msk.f32.vlgmr.msra.gmra.mrb[8].mxu1 %vm101_vm1, %v1006_v21  ;;  %1000 = vst.msk [vmem:[%s2321_s7 + $0x8] sm:$0x3] %vm436_vm4, %v2197_v22  ;;  %vm1017_vm9 = vcmp.lt.s32.totalorder %v1016_v34, %v2083_v19 }
 0xbb3   :  { %1652 = vmatpush1.bf16.msra.mxu1 %v1955_v57  ;;  %1371 = vmatprep.mubr.f32.mxu1 %v1774_v3 }
 0xbb4   :  { %1654 = vmatprep.subr.bf16.mxu1 %v1961_v59 }
 0xbb7   :  { %1656 = vmatpush1.bf16.msra.mxu1 %v1979_v0 }
 0xbb8   :  { %1658 = vmatprep.subr.bf16.mxu1 %v1989_v4 }
 0xbbb   :  { %1660 = vmatpush1.bf16.msra.mxu1 %v2009_v9 }
 0xbbc   :  { %1662 = vmatprep.subr.bf16.mxu1 %v2012_v10 }
 0xbbf   :  { %1664 = vmatpush1.bf16.msra.mxu1 %v2025_v13 }
 0xc19   :  { %v1122_v15 = vpop.permute.xlu1 %1121 }
 0xc85   :  { %v1087_v48 = vpop.f32.mrb[8].mxu1 }
 0xc86   :  { %v1089_v23 = vpop.f32.mrb[9].mxu1  ;;  %v1100_v3 = vrot.slane %v1087_v48, 6 }
 0xc87   :  { %v1101_v24 = vrot.slane %v1089_v23, 6  ;;  %v1783_v23 = vmov 1  }
 0xc88   :  { %v1104_v59 = vadd.f32 %v1100_v3, %v2051_v42 }
 0xc89   :  { %v1105_v25 = vadd.f32 %v1101_v24, %v2057_v45  ;;  %v1162_v24 = vsel %vm308_vm2, 6, %v1783_v23 }
 0xc8a   :  { %v1497_v0 = vmul.f32 -1.442695, %v1104_v59  ;;  %vm1163_vm10 = vcmp.lt.s32.totalorder %v1162_v24, %v2083_v19 }
 0xc8b   :  { %1738 = vtanh.f32 %v1105_v25  ;;  %v1498_v31 = vmul.f32 -1.442695, %v1105_v25 }
 0xc8c   :  { %1740 = vpow2.f32 %v1497_v0 }
 0xc95   :  { %v1739_v57 = vpop.eup %1738 }
 0xc96   :  { %1126 = vrot.lane.b32.xlu0 %v1739_v57, %s1776_s6  ;;  %v1741_v4 = vpop.eup %1740 }
 0xc97   :  { %v1112_v9 = vadd.f32 1.0, %v1741_v4 }
 0xc99   :  { %1742 = vrcp.f32 %v1112_v9 }
 0xca3   :  { %v1743_v10 = vpop.eup %1742 }
 0xca4   :  { %v1124_v26 = vmul.f32 %v1743_v10, %v1122_v15 }
 0xd08   :  { %v1127_v44 = vpop.permute.xlu0 %1126 }
 0xd09   :  { %v1129_v13 = vmul.f32 %v1743_v10, %v1127_v44 }
 0xd0b   :  { %1131 = vrot.lane.b32.xlu0 %v1129_v13, %s1776_s6 }
 0xd7d   :  { %v1132_v27 = vpop.permute.xlu0 %1131 }
 0xd7e   :  { %v1134_v28 = vadd.f32 %v1132_v27, %v1124_v26 }
 0xd80   :  { %1744 = vtanh.f32 %v1134_v28  ;;  %v1153_v14 = vrot.slane %v1134_v28, 2 }
 0xd81   :  { %1746 = vpow2.f32 %v1498_v31 }
 0xd82   :  { %1154 = vrot.lane.b32.xlu0 %v1153_v14, %s1776_s6 }
 0xd8a   :  { %v1745_v30 = vpop.eup %1744 }
 0xd8b   :  { %1137 = vrot.lane.b32.xlu1 %v1745_v30, %s1776_s6  ;;  %v1747_v32 = vpop.eup %1746 }
 0xd8c   :  { %v1113_v33 = vadd.f32 1.0, %v1747_v32 }
 0xd8e   :  { %1748 = vrcp.f32 %v1113_v33 }
 0xd98   :  { %v1749_v38 = vpop.eup %1748 }
 0xdf4   :  { %v1155_v36 = vpop.permute.xlu0 %1154 }
 0xdf5   :  { %v1157_v46 = vsel %vm1017_vm9, %v1155_v36, %v1011_v11 }
 0xdf6   :  { %v1260_v37 = vrot.slane %v1157_v46, 4 }
 0xdf8   :  { %1261 = vrot.lane.b32.xlu0 %v1260_v37, %s1776_s6 }
 0xdfd   :  { %v1138_v39 = vpop.permute.xlu1 %1137 }
 0xdfe   :  { %v1140_v40 = vmul.f32 %v1749_v38, %v1138_v39 }
 0xe00   :  { %v1142_v41 = vrot.slane %v1140_v40, 2 }
 0xe02   :  { %v1151_v50 = vsel %vm1017_vm9, %v1142_v41, %v1006_v21  ;;  %v2223_v52 = vsel %vm1017_vm9, %v1142_v41, 0.0  ;;  %v1302_v41 = vsel %vm308_vm2, 7, %v1775_v54 }
 0xe03   :  { %1499 = vmatmul.mubr.msk.f32.vlgmr.msra.gmra.mrb[10].mxu0 %vm101_vm1, %v1151_v50  ;;  %1145 = vst.msk [vmem:[%s2321_s7 + $0xa] sm:$0x3] %vm436_vm4, %v2223_v52  ;;  %vm1303_vm11 = vcmp.lt.s32.totalorder %v1302_v41, %v2083_v19 }
 0xe6a   :  { %v1262_v11 = vpop.permute.xlu0 %1261 }
 0xed6   :  { %v1233_v53 = vpop.f32.mrb[10].mxu0 }
 0xed7   :  { %v1235_v55 = vpop.f32.mrb[11].mxu0  ;;  %v1240_v62 = vrot.slane %v1233_v53, 4 }
 0xed8   :  { %v1241_v56 = vrot.slane %v1235_v55, 4 }
 0xed9   :  { %v1244_v63 = vadd.f32 %v1240_v62, %v2053_v43 }
 0xeda   :  { %v1245_v58 = vadd.f32 %v1241_v56, %v2061_v47 }
 0xedb   :  { %v1500_v1 = vmul.f32 -1.442695, %v1244_v63 }
 0xedc   :  { %1750 = vtanh.f32 %v1245_v58  ;;  %v1501_v43 = vmul.f32 -1.442695, %v1245_v58 }
 0xedd   :  { %1752 = vpow2.f32 %v1500_v1 }
 0xee6   :  { %v1751_v60 = vpop.eup %1750 }
 0xee7   :  { %1266 = vrot.lane.b32.xlu1 %v1751_v60, %s1776_s6  ;;  %v1753_v2 = vpop.eup %1752 }
 0xee8   :  { %v1252_v5 = vadd.f32 1.0, %v1753_v2 }
 0xeea   :  { %1754 = vrcp.f32 %v1252_v5 }
 0xef4   :  { %v1755_v6 = vpop.eup %1754 }
 0xef5   :  { %v1264_v12 = vmul.f32 %v1755_v6, %v1262_v11 }
 0xf59   :  { %v1267_v7 = vpop.permute.xlu1 %1266 }
 0xf5a   :  { %v1269_v8 = vmul.f32 %v1755_v6, %v1267_v7 }
 0xf5c   :  { %1271 = vrot.lane.b32.xlu1 %v1269_v8, %s1776_s6 }
 0xfce   :  { %v1272_v47 = vpop.permute.xlu1 %1271 }
 0xfcf   :  { %v1274_v16 = vadd.f32 %v1272_v47, %v1264_v12 }
 0xfd1   :  { %1756 = vtanh.f32 %v1274_v16  ;;  %v1293_v20 = vrot.slane %v1274_v16, 4 }
 0xfd2   :  { %1758 = vpow2.f32 %v1501_v43 }
 0xfd3   :  { %1294 = vrot.lane.b32.xlu1 %v1293_v20, %s1776_s6 }
 0xfdb   :  { %v1757_v51 = vpop.eup %1756 }
 0xfdc   :  { %1277 = vrot.lane.b32.xlu0 %v1757_v51, %s1776_s6  ;;  %v1759_v21 = vpop.eup %1758 }
 0xfdd   :  { %v1253_v48 = vadd.f32 1.0, %v1759_v21 }
 0xfdf   :  { %1760 = vrcp.f32 %v1253_v48 }
 0xfe9   :  { %v1761_v59 = vpop.eup %1760 }
0x1045   :  { %v1295_v25 = vpop.permute.xlu1 %1294 }
0x1046   :  { %v1297_v57 = vsel %vm1163_vm10, %v1295_v25, %v1157_v46 }
0x1047   :  { %v1400_v3 = vrot.slane %v1297_v57, 2 }
0x1049   :  { %1401 = vrot.lane.b32.xlu1 %v1400_v3, %s1776_s6 }
0x104e   :  { %v1278_v0 = vpop.permute.xlu0 %1277 }
0x104f   :  { %v1280_v4 = vmul.f32 %v1761_v59, %v1278_v0 }
0x1051   :  { %v1282_v9 = vrot.slane %v1280_v4, 4 }
0x1053   :  { %v1291_v10 = vsel %vm1163_vm10, %v1282_v9, %v1151_v50  ;;  %v1284_v44 = vsel %vm1163_vm10, %v1282_v9, 0.0 }
0x1054   :  { %1502 = vmatmul.mubr.msk.f32.vlgmr.msra.gmra.mrb[10].mxu1 %vm101_vm1, %v1291_v10  ;;  %1285 = vst.msk [vmem:[%s2321_s7 + $0xc] sm:$0x3] %vm436_vm4, %v1284_v44 }
0x10bb   :  { %v1402_v46 = vpop.permute.xlu1 %1401 }
0x1127   :  { %v1373_v13 = vpop.f32.mrb[10].mxu1 }
0x1128   :  { %v1375_v15 = vpop.f32.mrb[11].mxu1  ;;  %v1380_v14 = vrot.slane %v1373_v13, 2 }
0x1129   :  { %v1381_v26 = vrot.slane %v1375_v15, 2 }
0x112a   :  { %v1384_v30 = vadd.f32 %v1380_v14, %v2051_v42 }
0x112b   :  { %v1385_v27 = vadd.f32 %v1381_v26, %v2057_v45 }
0x112c   :  { %v1503_v31 = vmul.f32 -1.442695, %v1384_v30 }
0x112d   :  { %1762 = vtanh.f32 %v1385_v27 }
0x112e   :  { %1764 = vpow2.f32 %v1503_v31 }
0x1137   :  { %v1763_v28 = vpop.eup %1762 }
0x1138   :  { %1406 = vrot.lane.b32.xlu0 %v1763_v28, %s1776_s6  ;;  %v1765_v32 = vpop.eup %1764 }
0x1139   :  { %v1392_v33 = vadd.f32 1.0, %v1765_v32 }
0x113b   :  { %1766 = vrcp.f32 %v1392_v33 }
0x1145   :  { %v1767_v49 = vpop.eup %1766 }
0x1146   :  { %v1404_v37 = vmul.f32 %v1767_v49, %v1402_v46 }
0x11aa   :  { %v1407_v34 = vpop.permute.xlu0 %1406 }
0x11ab   :  { %v1409_v36 = vmul.f32 %v1767_v49, %v1407_v34 }
0x11ad   :  { %1411 = vrot.lane.b32.xlu0 %v1409_v36, %s1776_s6 }
0x121f   :  { %v1412_v45 = vpop.permute.xlu0 %1411 }
0x1220   :  { %v1414_v38 = vadd.f32 %v1412_v45, %v1404_v37 }
0x1222   :  { %1768 = vtanh.f32 %v1414_v38  ;;  %v1433_v39 = vrot.slane %v1414_v38, 6 }
0x1224   :  { %1434 = vrot.lane.b32.xlu0 %v1433_v39, %s1776_s6 }
0x1228   :  { %584 = vrot.lane.b32.xlu0 %v2117_v18, %s1784_s4  ;;  %v1504_v18 = vmul.f32 -1.442695, %v1385_v27 }
0x122a   :  { %1770 = vpow2.f32 %v1504_v18 }
0x122c   :  { %v1769_v42 = vpop.eup %1768  ;;  %864 = vrot.lane.b32.xlu0 %v2171_v35, %s1784_s4 }
0x122d   :  { %1417 = vrot.lane.b32.xlu1 %v1769_v42, %s1776_s6 }
0x1230   :  { %1147 = vrot.lane.b32.xlu0 %v2223_v52, %s1784_s4 }
0x1231   :  { %439 = vrot.lane.b32.xlu1 %v2090_v29, %s1784_s4 }
0x1234   :  { %v1771_v40 = vpop.eup %1770 }
0x1235   :  { %724 = vrot.lane.b32.xlu1 %v2144_v61, %s1784_s4  ;;  %v1393_v35 = vadd.f32 1.0, %v1771_v40 }
0x1237   :  { %1772 = vrcp.f32 %v1393_v35 }
0x1239   :  { %1002 = vrot.lane.b32.xlu1 %v2197_v22, %s1784_s4 }
0x123d   :  { %1287 = vrot.lane.b32.xlu1 %v1284_v44, %s1784_s4 }
0x1241   :  { %v1773_v52 = vpop.eup %1772 }
0x1296   :  { %v1435_v29 = vpop.permute.xlu0 %1434 }
0x1297   :  { %v1437_v61 = vsel %vm1303_vm11, %v1435_v29, %v1297_v57 }
0x1298   :  { %1440 = vst.msk [vmem:[#allocation3] sm:$0x3] %vm68_vm0, %v1437_v61 }
0x129a   :  { %v585_v22 = vpop.permute.xlu0 %584 }
0x129b   :  { %587 = vst.msk [vmem:[%s2322_s8 + $0xc] sm:$0x3] %vm436_vm4, %v585_v22 }
0x129e   :  { %v865_v50 = vpop.permute.xlu0 %864 }
0x129f   :  { %867 = vst.msk [vmem:[%s2322_s8 + $0x8] sm:$0x3] %vm436_vm4, %v865_v50  ;;  %v1418_v54 = vpop.permute.xlu1 %1417 }
0x12a0   :  { %v1420_v17 = vmul.f32 %v1773_v52, %v1418_v54 }
0x12a2   :  { %v1422_v53 = vrot.slane %v1420_v17, 6  ;;  %v1148_v55 = vpop.permute.xlu0 %1147 }
0x12a3   :  { %1150 = vst.msk [vmem:[%s2322_s8 + $0x4] sm:$0x3] %vm436_vm4, %v1148_v55  ;;  %v440_v56 = vpop.permute.xlu1 %439 }
0x12a4   :  { %v1431_v58 = vsel %vm1303_vm11, %v1422_v53, %v1291_v10  ;;  %442 = vst.msk [vmem:[%s2322_s8 + $0xe] sm:$0x3] %vm436_vm4, %v440_v56  ;;  %v1424_v60 = vsel %vm1303_vm11, %v1422_v53, 0.0 }
0x12a5   :  { %1439 = vst.msk [vmem:[#allocation2] sm:$0x3] %vm68_vm0, %v1431_v58  ;;  %1427 = vrot.lane.b32.xlu0 %v1424_v60, %s1784_s4 }
0x12a6   :  { %1425 = vst.msk [vmem:[%s2321_s7 + $0xe] sm:$0x3] %vm436_vm4, %v1424_v60 }
0x12a7   :  { %v725_v62 = vpop.permute.xlu1 %724 }
0x12a8   :  { %727 = vst.msk [vmem:[%s2322_s8 + $0xa] sm:$0x3] %vm436_vm4, %v725_v62 }
0x12ab   :  { %v1003_v63 = vpop.permute.xlu1 %1002 }
0x12ac   :  { %1005 = vst.msk [vmem:[%s2322_s8 + $0x6] sm:$0x3] %vm436_vm4, %v1003_v63 }
0x12af   :  { %v1288_v19 = vpop.permute.xlu1 %1287 }
0x12b0   :  { %1290 = vst.msk [vmem:[%s2322_s8 + $0x2] sm:$0x3] %vm436_vm4, %v1288_v19 }
0x1317   :  { %v1428_v1 = vpop.permute.xlu0 %1427 }
0x1318   :  { %1430 = vst.msk [vmem:[%s2322_s8] sm:$0x3] %vm436_vm4, %v1428_v1 }

</bundles_post_ra>
